<compile_context>
chip_gen: v6e
topology: v6e:2x2x1
jax: 0.10.0
libtpu: 0.0.40
codegen_flags: <defaults>
</compile_context>

<pallas_src>
import jax
import jax.numpy as jnp
from jax import lax
from jax.experimental import pallas as pl
from jax.experimental.pallas import tpu as pltpu


def _mish(x):
    # mish(x) = x * tanh(softplus(x)) = x * ((1+e^x)^2 - 1) / ((1+e^x)^2 + 1)
    # One exp (EUP) + one approx reciprocal (EUP); rest is VPU. Guard large x.
    t = jnp.exp(jnp.minimum(x, 20.0))
    sp1 = (1.0 + t) * (1.0 + t)
    y = x * (sp1 - 1.0) * pl.reciprocal(sp1 + 1.0, approx=True)
    return jnp.where(x > 20.0, x, y)


def _build_fused_kernel(n_tiles, total_positions):
    """Fused encoder + global max/avg pool + head.  total_positions = n*H*W."""
    inv_r = 1.0 / float(total_positions)

    def kernel(*args):
        x_refs = args[:n_tiles]
        (ewT_ref, ebT_ref, w1m_ref, w1a_ref, b1_ref, w2_ref, b2_ref,
         o_ref, max_sc, sum_sc) = args[n_tiles:]

        s = pl.program_id(1)

        @pl.when(s == 0)
        def _init():
            max_sc[...] = jnp.full_like(max_sc, -jnp.inf)
            sum_sc[...] = jnp.zeros_like(sum_sc)

        run_max = max_sc[...]                       # (nc, 1)
        run_sum = sum_sc[...]                       # (nc, 1)
        ewT = ewT_ref[...]                          # (nc, Cin)
        ebT = ebT_ref[...]                          # (nc, 1)

        # ---- encoder stand-in + fused global max/sum pooling ----------------
        # Channels-major: spatial positions stay on the lane axis (dense).
        for x_ref in x_refs:                        # static unroll over n tiles
            xt = x_ref[0]                           # (Cin, tw)
            featT = jnp.dot(ewT, xt, preferred_element_type=jnp.float32)
            featT = _mish(featT + ebT)              # (nc, tw)
            run_max = jnp.maximum(run_max,
                                  jnp.max(featT, axis=1, keepdims=True))
            run_sum = run_sum + jnp.sum(featT, axis=1, keepdims=True)

        max_sc[...] = run_max
        sum_sc[...] = run_sum

        # ---- head epilogue on the last spatial tile of this batch element ---
        @pl.when(s == pl.num_programs(1) - 1)
        def _finalize():
            mx = max_sc[...]                        # (nc, 1)
            av = sum_sc[...] * inv_r                # (nc, 1)
            # concat([max, avg]) @ W1  ==  max . W1_max + avg . W1_avg
            # (column-pooled vectors -> row hidden via broadcast-mul + reduce)
            h = (jnp.sum(w1m_ref[...] * mx, axis=0, keepdims=True)
                 + jnp.sum(w1a_ref[...] * av, axis=0, keepdims=True)
                 + b1_ref[...])                     # (1, hid)
            h = _mish(h)
            # BatchNorm1d (eval) folded into w2/b2; Dropout(0.5) = identity.
            out = (jnp.dot(h, w2_ref[...], preferred_element_type=jnp.float32)
                   + b2_ref[...])                   # (1, ncls)
            o_ref[...] = out.reshape(o_ref.shape).astype(o_ref.dtype)

    return kernel


def semi_resnext_list_forward(xs, params, *, spatial_tile=2048):
    """xs: list of n_tiles arrays, each (B, Cin, H, W) in NCHW (PyTorch conv.)"""
    n_tiles = len(xs)
    B, Cin, H, W = xs[0].shape
    HW = H * W
    R = n_tiles * HW

    # Free reshape only -- no stack / transpose of the bulk input in HBM.
    xs_flat = [x.reshape(B, Cin, HW) for x in xs]

    nc = params["enc_w"].shape[1]
    hid = params["w1"].shape[1]
    ncls = params["w2"].shape[1]

    # Tiny weight transposes / folds (negligible next to the input traffic).
    ewT = jnp.transpose(params["enc_w"])            # (nc, Cin)
    ebT = params["enc_b"].reshape(nc, 1)            # (nc, 1)
    w1_max = params["w1"][:nc]                      # AdaptiveConcatPool2d: [max|avg]
    w1_avg = params["w1"][nc:]
    scale = params["gamma"] * lax.rsqrt(params["rvar"] + 1e-5)          # (1, hid)
    w2f = params["w2"] * scale.reshape(hid, 1)                          # (hid, ncls)
    b2f = params["b2"] + (params["beta"] - params["rmean"] * scale) @ params["w2"]

    # Spatial tile: multiple of 128 lanes that divides HW exactly (no masking,
    # no partial edge blocks).  Falls back to the whole spatial extent.
    tw = HW
    if HW > spatial_tile:
        cand = (spatial_tile // 128) * 128
        while cand >= 128 and HW % cand != 0:
            cand -= 128
        if cand >= 128:
            tw = cand
    grid = (B, HW // tw)

    kernel = _build_fused_kernel(n_tiles, R)

    x_spec = pl.BlockSpec((1, Cin, tw), lambda b, s: (b, 0, s))
    const = lambda b, s: (0, 0)

    out = pl.pallas_call(
        kernel,
        out_shape=jax.ShapeDtypeStruct((B, 1, ncls), jnp.float32),
        grid_spec=pltpu.PrefetchScalarGridSpec(
            num_scalar_prefetch=0,
            grid=grid,
            in_specs=[x_spec] * n_tiles + [
                pl.BlockSpec((nc, Cin), const),     # enc_w^T
                pl.BlockSpec((nc, 1), const),       # enc_b^T
                pl.BlockSpec((nc, hid), const),     # w1 (max half)
                pl.BlockSpec((nc, hid), const),     # w1 (avg half)
                pl.BlockSpec((1, hid), const),      # b1
                pl.BlockSpec((hid, ncls), const),   # w2 (BN folded)
                pl.BlockSpec((1, ncls), const),     # b2 (BN folded)
            ],
            out_specs=pl.BlockSpec((1, 1, ncls), lambda b, s: (b, 0, 0)),
            scratch_shapes=[
                pltpu.VMEM((nc, 1), jnp.float32),   # running max
                pltpu.VMEM((nc, 1), jnp.float32),   # running sum
            ],
        ),
        compiler_params=pltpu.CompilerParams(
            dimension_semantics=("parallel", "arbitrary"),
            vmem_limit_bytes=48 * 1024 * 1024,      # headroom for v7x (64 MiB VMEM)
        ),
    )(*xs_flat, ewT, ebT, w1_max, w1_avg, params["b1"], w2f, b2f)

    return out[:, 0, :]


if __name__ == "__main__":
    B, Cin, H, W = 2, 3, 16, 16
    n_tiles = 4          # number of image tiles passed to forward(*x)
    nc = 32              # stand-in encoder feature channels (real model: 2048)
    hidden = 512         # head hidden width (matches module)
    n_classes = 6        # n in __init__

    key = jax.random.PRNGKey(0)
    ks = jax.random.split(key, 16)

    xs = [jax.random.normal(ks[i], (B, Cin, H, W), jnp.float32)
          for i in range(n_tiles)]

    params = {
        "enc_w": jax.random.normal(ks[4], (Cin, nc), jnp.float32) * 0.1,
        "enc_b": jax.random.normal(ks[5], (1, nc), jnp.float32) * 0.01,
        "w1":    jax.random.normal(ks[6], (2 * nc, hidden), jnp.float32)
                 * (1.0 / jnp.sqrt(2.0 * nc)),
        "b1":    jax.random.normal(ks[7], (1, hidden), jnp.float32) * 0.01,
        "gamma": jnp.abs(jax.random.normal(ks[8], (1, hidden), jnp.float32)) + 0.5,
        "beta":  jax.random.normal(ks[9], (1, hidden), jnp.float32) * 0.01,
        "rmean": jax.random.normal(ks[10], (1, hidden), jnp.float32) * 0.01,
        "rvar":  jnp.abs(jax.random.normal(ks[11], (1, hidden), jnp.float32)) + 0.5,
        "w2":    jax.random.normal(ks[12], (hidden, n_classes), jnp.float32)
                 * (1.0 / jnp.sqrt(1.0 * hidden)),
        "b2":    jax.random.normal(ks[13], (1, n_classes), jnp.float32) * 0.01,
    }

    out = semi_resnext_list_forward(xs, params)
    out = jax.block_until_ready(out)
    assert out.shape == (B, n_classes), out.shape
    assert jnp.all(jnp.isfinite(out))
    print("KERNEL_OK")
</pallas_src>

<mosaic_0001>
module attributes {stable_mosaic.version = 11 : i64} {
  func.func @kernel(%arg0: i32, %arg1: i32, %arg2: memref<1x3x256xf32, #tpu.memory_space<vmem>>, %arg3: memref<1x3x256xf32, #tpu.memory_space<vmem>>, %arg4: memref<1x3x256xf32, #tpu.memory_space<vmem>>, %arg5: memref<1x3x256xf32, #tpu.memory_space<vmem>>, %arg6: memref<32x3xf32, #tpu.memory_space<vmem>>, %arg7: memref<32x1xf32, #tpu.memory_space<vmem>>, %arg8: memref<32x512xf32, #tpu.memory_space<vmem>>, %arg9: memref<32x512xf32, #tpu.memory_space<vmem>>, %arg10: memref<1x512xf32, #tpu.memory_space<vmem>>, %arg11: memref<512x6xf32, #tpu.memory_space<vmem>>, %arg12: memref<1x6xf32, #tpu.memory_space<vmem>>, %arg13: memref<1x1x6xf32, #tpu.memory_space<vmem>>, %arg14: memref<32x1xf32, #tpu.memory_space<vmem>>, %arg15: memref<32x1xf32, #tpu.memory_space<vmem>>) attributes {dimension_semantics = [#tpu.dimension_semantics<parallel>, #tpu.dimension_semantics<arbitrary>], iteration_bounds = array<i64: 2, 1>, scalar_prefetch = 0 : i64, scratch_operands = 2 : i64, tpu.core_type = #tpu.core_type<tc>, window_params = [{transform_indices = @transform_0, window_bounds = array<i64: 1, 3, 256>}, {transform_indices = @transform_1, window_bounds = array<i64: 1, 3, 256>}, {transform_indices = @transform_2, window_bounds = array<i64: 1, 3, 256>}, {transform_indices = @transform_3, window_bounds = array<i64: 1, 3, 256>}, {pipeline_mode = #tpu.pipeline_mode<synchronous>, transform_indices = @transform_4, window_bounds = array<i64: 32, 3>}, {pipeline_mode = #tpu.pipeline_mode<synchronous>, transform_indices = @transform_5, window_bounds = array<i64: 32, 1>}, {pipeline_mode = #tpu.pipeline_mode<synchronous>, transform_indices = @transform_6, window_bounds = array<i64: 32, 512>}, {pipeline_mode = #tpu.pipeline_mode<synchronous>, transform_indices = @transform_7, window_bounds = array<i64: 32, 512>}, {pipeline_mode = #tpu.pipeline_mode<synchronous>, transform_indices = @transform_8, window_bounds = array<i64: 1, 512>}, {pipeline_mode = #tpu.pipeline_mode<synchronous>, transform_indices = @transform_9, window_bounds = array<i64: 512, 6>}, {pipeline_mode = #tpu.pipeline_mode<synchronous>, transform_indices = @transform_10, window_bounds = array<i64: 1, 6>}, {transform_indices = @transform_11, window_bounds = array<i64: 1, 1, 6>}]} {
    %c0_i32 = arith.constant 0 : i32
    %0 = arith.cmpi eq, %arg1, %c0_i32 : i32
    %1 = arith.extui %0 : i1 to i32
    %c0_i32_0 = arith.constant 0 : i32
    %2 = arith.cmpi ne, %1, %c0_i32_0 : i32
    scf.if %2 {
      %cst_61 = arith.constant 0xFF800000 : f32
      %128 = vector.broadcast %cst_61 : f32 to vector<32x1xf32>
      %c0_62 = arith.constant 0 : index
      %c0_63 = arith.constant 0 : index
      %129 = vector.load %arg14[%c0_62, %c0_63] : memref<32x1xf32, #tpu.memory_space<vmem>>, vector<32x1xf32>
      tpu.vector_store %arg14[%c0_62, %c0_63], %128 {strides = array<i32>} : memref<32x1xf32, #tpu.memory_space<vmem>>, vector<32x1xf32>,
      %cst_64 = arith.constant 0.000000e+00 : f32
      %130 = vector.broadcast %cst_64 : f32 to vector<32x1xf32>
      %c0_65 = arith.constant 0 : index
      %c0_66 = arith.constant 0 : index
      %131 = vector.load %arg15[%c0_65, %c0_66] : memref<32x1xf32, #tpu.memory_space<vmem>>, vector<32x1xf32>
      tpu.vector_store %arg15[%c0_65, %c0_66], %130 {strides = array<i32>} : memref<32x1xf32, #tpu.memory_space<vmem>>, vector<32x1xf32>,
    } else {
    }
    %c0 = arith.constant 0 : index
    %c0_1 = arith.constant 0 : index
    %3 = vector.load %arg14[%c0, %c0_1] : memref<32x1xf32, #tpu.memory_space<vmem>>, vector<32x1xf32>
    %c0_2 = arith.constant 0 : index
    %c0_3 = arith.constant 0 : index
    %4 = vector.load %arg15[%c0_2, %c0_3] : memref<32x1xf32, #tpu.memory_space<vmem>>, vector<32x1xf32>
    %c0_4 = arith.constant 0 : index
    %c0_5 = arith.constant 0 : index
    %5 = vector.load %arg6[%c0_4, %c0_5] : memref<32x3xf32, #tpu.memory_space<vmem>>, vector<32x3xf32>
    %c0_6 = arith.constant 0 : index
    %c0_7 = arith.constant 0 : index
    %6 = vector.load %arg7[%c0_6, %c0_7] : memref<32x1xf32, #tpu.memory_space<vmem>>, vector<32x1xf32>
    %c0_8 = arith.constant 0 : index
    %c0_9 = arith.constant 0 : index
    %c0_10 = arith.constant 0 : index
    %7 = vector.load %arg2[%c0_8, %c0_9, %c0_10] : memref<1x3x256xf32, #tpu.memory_space<vmem>>, vector<1x3x256xf32>
    %8 = vector.shape_cast %7 : vector<1x3x256xf32> to vector<3x256xf32>
    %cst = arith.constant dense<0.000000e+00> : vector<32x256xf32>
    %9 = tpu.matmul %5, %8, %cst {dimension_numbers = #tpu.dot_dimension_numbers<[1], [0], [0], [1], [0, 0, 1, 1], [], []>} : vector<32x3xf32>, vector<3x256xf32>, vector<32x256xf32> -> vector<32x256xf32>
    %10 = vector.broadcast %6 : vector<32x1xf32> to vector<32x256xf32>
    %11 = arith.addf %9, %10 : vector<32x256xf32>
    %cst_11 = arith.constant 2.000000e+01 : f32
    %12 = vector.broadcast %cst_11 : f32 to vector<32x256xf32>
    %13 = arith.minimumf %11, %12 : vector<32x256xf32>
    %14 = math.exp %13 : vector<32x256xf32>
    %cst_12 = arith.constant 1.000000e+00 : f32
    %15 = vector.broadcast %cst_12 : f32 to vector<32x256xf32>
    %16 = arith.addf %15, %14 : vector<32x256xf32>
    %cst_13 = arith.constant 1.000000e+00 : f32
    %17 = vector.broadcast %cst_13 : f32 to vector<32x256xf32>
    %18 = arith.addf %17, %14 : vector<32x256xf32>
    %19 = arith.mulf %16, %18 : vector<32x256xf32>
    %cst_14 = arith.constant 1.000000e+00 : f32
    %20 = vector.broadcast %cst_14 : f32 to vector<32x256xf32>
    %21 = arith.subf %19, %20 : vector<32x256xf32>
    %22 = arith.mulf %11, %21 : vector<32x256xf32>
    %cst_15 = arith.constant 1.000000e+00 : f32
    %23 = vector.broadcast %cst_15 : f32 to vector<32x256xf32>
    %24 = arith.addf %19, %23 : vector<32x256xf32>
    %25 = tpu.reciprocal %24 {approx = true} : vector<32x256xf32> -> vector<32x256xf32>
    %26 = arith.mulf %22, %25 : vector<32x256xf32>
    %cst_16 = arith.constant 2.000000e+01 : f32
    %27 = vector.broadcast %cst_16 : f32 to vector<32x256xf32>
    %28 = arith.cmpf ogt, %11, %27 : vector<32x256xf32>
    %29 = arith.select %28, %11, %26 : vector<32x256xi1>, vector<32x256xf32>
    %cst_17 = arith.constant dense<0xFF800000> : vector<32xf32>
    %30 = vector.multi_reduction <maximumf>, %29, %cst_17 [1] : vector<32x256xf32> to vector<32xf32>
    %31 = vector.shape_cast %30 : vector<32xf32> to vector<32x1xf32>
    %32 = arith.maximumf %3, %31 : vector<32x1xf32>
    %cst_18 = arith.constant dense<0.000000e+00> : vector<32xf32>
    %33 = vector.multi_reduction <add>, %29, %cst_18 [1] : vector<32x256xf32> to vector<32xf32>
    %34 = vector.shape_cast %33 : vector<32xf32> to vector<32x1xf32>
    %35 = arith.addf %4, %34 : vector<32x1xf32>
    %c0_19 = arith.constant 0 : index
    %c0_20 = arith.constant 0 : index
    %c0_21 = arith.constant 0 : index
    %36 = vector.load %arg3[%c0_19, %c0_20, %c0_21] : memref<1x3x256xf32, #tpu.memory_space<vmem>>, vector<1x3x256xf32>
    %37 = vector.shape_cast %36 : vector<1x3x256xf32> to vector<3x256xf32>
    %cst_22 = arith.constant dense<0.000000e+00> : vector<32x256xf32>
    %38 = tpu.matmul %5, %37, %cst_22 {dimension_numbers = #tpu.dot_dimension_numbers<[1], [0], [0], [1], [0, 0, 1, 1], [], []>} : vector<32x3xf32>, vector<3x256xf32>, vector<32x256xf32> -> vector<32x256xf32>
    %39 = vector.broadcast %6 : vector<32x1xf32> to vector<32x256xf32>
    %40 = arith.addf %38, %39 : vector<32x256xf32>
    %cst_23 = arith.constant 2.000000e+01 : f32
    %41 = vector.broadcast %cst_23 : f32 to vector<32x256xf32>
    %42 = arith.minimumf %40, %41 : vector<32x256xf32>
    %43 = math.exp %42 : vector<32x256xf32>
    %cst_24 = arith.constant 1.000000e+00 : f32
    %44 = vector.broadcast %cst_24 : f32 to vector<32x256xf32>
    %45 = arith.addf %44, %43 : vector<32x256xf32>
    %cst_25 = arith.constant 1.000000e+00 : f32
    %46 = vector.broadcast %cst_25 : f32 to vector<32x256xf32>
    %47 = arith.addf %46, %43 : vector<32x256xf32>
    %48 = arith.mulf %45, %47 : vector<32x256xf32>
    %cst_26 = arith.constant 1.000000e+00 : f32
    %49 = vector.broadcast %cst_26 : f32 to vector<32x256xf32>
    %50 = arith.subf %48, %49 : vector<32x256xf32>
    %51 = arith.mulf %40, %50 : vector<32x256xf32>
    %cst_27 = arith.constant 1.000000e+00 : f32
    %52 = vector.broadcast %cst_27 : f32 to vector<32x256xf32>
    %53 = arith.addf %48, %52 : vector<32x256xf32>
    %54 = tpu.reciprocal %53 {approx = true} : vector<32x256xf32> -> vector<32x256xf32>
    %55 = arith.mulf %51, %54 : vector<32x256xf32>
    %cst_28 = arith.constant 2.000000e+01 : f32
    %56 = vector.broadcast %cst_28 : f32 to vector<32x256xf32>
    %57 = arith.cmpf ogt, %40, %56 : vector<32x256xf32>
    %58 = arith.select %57, %40, %55 : vector<32x256xi1>, vector<32x256xf32>
    %cst_29 = arith.constant dense<0xFF800000> : vector<32xf32>
    %59 = vector.multi_reduction <maximumf>, %58, %cst_29 [1] : vector<32x256xf32> to vector<32xf32>
    %60 = vector.shape_cast %59 : vector<32xf32> to vector<32x1xf32>
    %61 = arith.maximumf %32, %60 : vector<32x1xf32>
    %cst_30 = arith.constant dense<0.000000e+00> : vector<32xf32>
    %62 = vector.multi_reduction <add>, %58, %cst_30 [1] : vector<32x256xf32> to vector<32xf32>
    %63 = vector.shape_cast %62 : vector<32xf32> to vector<32x1xf32>
    %64 = arith.addf %35, %63 : vector<32x1xf32>
    %c0_31 = arith.constant 0 : index
    %c0_32 = arith.constant 0 : index
    %c0_33 = arith.constant 0 : index
    %65 = vector.load %arg4[%c0_31, %c0_32, %c0_33] : memref<1x3x256xf32, #tpu.memory_space<vmem>>, vector<1x3x256xf32>
    %66 = vector.shape_cast %65 : vector<1x3x256xf32> to vector<3x256xf32>
    %cst_34 = arith.constant dense<0.000000e+00> : vector<32x256xf32>
    %67 = tpu.matmul %5, %66, %cst_34 {dimension_numbers = #tpu.dot_dimension_numbers<[1], [0], [0], [1], [0, 0, 1, 1], [], []>} : vector<32x3xf32>, vector<3x256xf32>, vector<32x256xf32> -> vector<32x256xf32>
    %68 = vector.broadcast %6 : vector<32x1xf32> to vector<32x256xf32>
    %69 = arith.addf %67, %68 : vector<32x256xf32>
    %cst_35 = arith.constant 2.000000e+01 : f32
    %70 = vector.broadcast %cst_35 : f32 to vector<32x256xf32>
    %71 = arith.minimumf %69, %70 : vector<32x256xf32>
    %72 = math.exp %71 : vector<32x256xf32>
    %cst_36 = arith.constant 1.000000e+00 : f32
    %73 = vector.broadcast %cst_36 : f32 to vector<32x256xf32>
    %74 = arith.addf %73, %72 : vector<32x256xf32>
    %cst_37 = arith.constant 1.000000e+00 : f32
    %75 = vector.broadcast %cst_37 : f32 to vector<32x256xf32>
    %76 = arith.addf %75, %72 : vector<32x256xf32>
    %77 = arith.mulf %74, %76 : vector<32x256xf32>
    %cst_38 = arith.constant 1.000000e+00 : f32
    %78 = vector.broadcast %cst_38 : f32 to vector<32x256xf32>
    %79 = arith.subf %77, %78 : vector<32x256xf32>
    %80 = arith.mulf %69, %79 : vector<32x256xf32>
    %cst_39 = arith.constant 1.000000e+00 : f32
    %81 = vector.broadcast %cst_39 : f32 to vector<32x256xf32>
    %82 = arith.addf %77, %81 : vector<32x256xf32>
    %83 = tpu.reciprocal %82 {approx = true} : vector<32x256xf32> -> vector<32x256xf32>
    %84 = arith.mulf %80, %83 : vector<32x256xf32>
    %cst_40 = arith.constant 2.000000e+01 : f32
    %85 = vector.broadcast %cst_40 : f32 to vector<32x256xf32>
    %86 = arith.cmpf ogt, %69, %85 : vector<32x256xf32>
    %87 = arith.select %86, %69, %84 : vector<32x256xi1>, vector<32x256xf32>
    %cst_41 = arith.constant dense<0xFF800000> : vector<32xf32>
    %88 = vector.multi_reduction <maximumf>, %87, %cst_41 [1] : vector<32x256xf32> to vector<32xf32>
    %89 = vector.shape_cast %88 : vector<32xf32> to vector<32x1xf32>
    %90 = arith.maximumf %61, %89 : vector<32x1xf32>
    %cst_42 = arith.constant dense<0.000000e+00> : vector<32xf32>
    %91 = vector.multi_reduction <add>, %87, %cst_42 [1] : vector<32x256xf32> to vector<32xf32>
    %92 = vector.shape_cast %91 : vector<32xf32> to vector<32x1xf32>
    %93 = arith.addf %64, %92 : vector<32x1xf32>
    %c0_43 = arith.constant 0 : index
    %c0_44 = arith.constant 0 : index
    %c0_45 = arith.constant 0 : index
    %94 = vector.load %arg5[%c0_43, %c0_44, %c0_45] : memref<1x3x256xf32, #tpu.memory_space<vmem>>, vector<1x3x256xf32>
    %95 = vector.shape_cast %94 : vector<1x3x256xf32> to vector<3x256xf32>
    %cst_46 = arith.constant dense<0.000000e+00> : vector<32x256xf32>
    %96 = tpu.matmul %5, %95, %cst_46 {dimension_numbers = #tpu.dot_dimension_numbers<[1], [0], [0], [1], [0, 0, 1, 1], [], []>} : vector<32x3xf32>, vector<3x256xf32>, vector<32x256xf32> -> vector<32x256xf32>
    %97 = vector.broadcast %6 : vector<32x1xf32> to vector<32x256xf32>
    %98 = arith.addf %96, %97 : vector<32x256xf32>
    %cst_47 = arith.constant 2.000000e+01 : f32
    %99 = vector.broadcast %cst_47 : f32 to vector<32x256xf32>
    %100 = arith.minimumf %98, %99 : vector<32x256xf32>
    %101 = math.exp %100 : vector<32x256xf32>
    %cst_48 = arith.constant 1.000000e+00 : f32
    %102 = vector.broadcast %cst_48 : f32 to vector<32x256xf32>
    %103 = arith.addf %102, %101 : vector<32x256xf32>
    %cst_49 = arith.constant 1.000000e+00 : f32
    %104 = vector.broadcast %cst_49 : f32 to vector<32x256xf32>
    %105 = arith.addf %104, %101 : vector<32x256xf32>
    %106 = arith.mulf %103, %105 : vector<32x256xf32>
    %cst_50 = arith.constant 1.000000e+00 : f32
    %107 = vector.broadcast %cst_50 : f32 to vector<32x256xf32>
    %108 = arith.subf %106, %107 : vector<32x256xf32>
    %109 = arith.mulf %98, %108 : vector<32x256xf32>
    %cst_51 = arith.constant 1.000000e+00 : f32
    %110 = vector.broadcast %cst_51 : f32 to vector<32x256xf32>
    %111 = arith.addf %106, %110 : vector<32x256xf32>
    %112 = tpu.reciprocal %111 {approx = true} : vector<32x256xf32> -> vector<32x256xf32>
    %113 = arith.mulf %109, %112 : vector<32x256xf32>
    %cst_52 = arith.constant 2.000000e+01 : f32
    %114 = vector.broadcast %cst_52 : f32 to vector<32x256xf32>
    %115 = arith.cmpf ogt, %98, %114 : vector<32x256xf32>
    %116 = arith.select %115, %98, %113 : vector<32x256xi1>, vector<32x256xf32>
    %cst_53 = arith.constant dense<0xFF800000> : vector<32xf32>
    %117 = vector.multi_reduction <maximumf>, %116, %cst_53 [1] : vector<32x256xf32> to vector<32xf32>
    %118 = vector.shape_cast %117 : vector<32xf32> to vector<32x1xf32>
    %119 = arith.maximumf %90, %118 : vector<32x1xf32>
    %cst_54 = arith.constant dense<0.000000e+00> : vector<32xf32>
    %120 = vector.multi_reduction <add>, %116, %cst_54 [1] : vector<32x256xf32> to vector<32xf32>
    %121 = vector.shape_cast %120 : vector<32xf32> to vector<32x1xf32>
    %122 = arith.addf %93, %121 : vector<32x1xf32>
    %c0_55 = arith.constant 0 : index
    %c0_56 = arith.constant 0 : index
    %123 = vector.load %arg14[%c0_55, %c0_56] : memref<32x1xf32, #tpu.memory_space<vmem>>, vector<32x1xf32>
    tpu.vector_store %arg14[%c0_55, %c0_56], %119 {strides = array<i32>} : memref<32x1xf32, #tpu.memory_space<vmem>>, vector<32x1xf32>,
    %c0_57 = arith.constant 0 : index
    %c0_58 = arith.constant 0 : index
    %124 = vector.load %arg15[%c0_57, %c0_58] : memref<32x1xf32, #tpu.memory_space<vmem>>, vector<32x1xf32>
    tpu.vector_store %arg15[%c0_57, %c0_58], %122 {strides = array<i32>} : memref<32x1xf32, #tpu.memory_space<vmem>>, vector<32x1xf32>,
    %c0_i32_59 = arith.constant 0 : i32
    %125 = arith.cmpi eq, %arg1, %c0_i32_59 : i32
    %126 = arith.extui %125 : i1 to i32
    %c0_i32_60 = arith.constant 0 : i32
    %127 = arith.cmpi ne, %126, %c0_i32_60 : i32
    scf.if %127 {
      %c0_61 = arith.constant 0 : index
      %c0_62 = arith.constant 0 : index
      %128 = vector.load %arg14[%c0_61, %c0_62] : memref<32x1xf32, #tpu.memory_space<vmem>>, vector<32x1xf32>
      %c0_63 = arith.constant 0 : index
      %c0_64 = arith.constant 0 : index
      %129 = vector.load %arg15[%c0_63, %c0_64] : memref<32x1xf32, #tpu.memory_space<vmem>>, vector<32x1xf32>
      %cst_65 = arith.constant 9.765625E-4 : f32
      %130 = vector.broadcast %cst_65 : f32 to vector<32x1xf32>
      %131 = arith.mulf %129, %130 : vector<32x1xf32>
      %c0_66 = arith.constant 0 : index
      %c0_67 = arith.constant 0 : index
      %132 = vector.load %arg8[%c0_66, %c0_67] : memref<32x512xf32, #tpu.memory_space<vmem>>, vector<32x512xf32>
      %133 = vector.broadcast %128 : vector<32x1xf32> to vector<32x512xf32>
      %134 = arith.mulf %132, %133 : vector<32x512xf32>
      %cst_68 = arith.constant dense<0.000000e+00> : vector<512xf32>
      %135 = vector.multi_reduction <add>, %134, %cst_68 [0] : vector<32x512xf32> to vector<512xf32>
      %136 = vector.shape_cast %135 : vector<512xf32> to vector<1x512xf32>
      %c0_69 = arith.constant 0 : index
      %c0_70 = arith.constant 0 : index
      %137 = vector.load %arg9[%c0_69, %c0_70] : memref<32x512xf32, #tpu.memory_space<vmem>>, vector<32x512xf32>
      %138 = vector.broadcast %131 : vector<32x1xf32> to vector<32x512xf32>
      %139 = arith.mulf %137, %138 : vector<32x512xf32>
      %cst_71 = arith.constant dense<0.000000e+00> : vector<512xf32>
      %140 = vector.multi_reduction <add>, %139, %cst_71 [0] : vector<32x512xf32> to vector<512xf32>
      %141 = vector.shape_cast %140 : vector<512xf32> to vector<1x512xf32>
      %142 = arith.addf %136, %141 : vector<1x512xf32>
      %c0_72 = arith.constant 0 : index
      %c0_73 = arith.constant 0 : index
      %143 = vector.load %arg10[%c0_72, %c0_73] : memref<1x512xf32, #tpu.memory_space<vmem>>, vector<1x512xf32>
      %144 = arith.addf %142, %143 : vector<1x512xf32>
      %cst_74 = arith.constant 2.000000e+01 : f32
      %145 = vector.broadcast %cst_74 : f32 to vector<1x512xf32>
      %146 = arith.minimumf %144, %145 : vector<1x512xf32>
      %147 = math.exp %146 : vector<1x512xf32>
      %cst_75 = arith.constant 1.000000e+00 : f32
      %148 = vector.broadcast %cst_75 : f32 to vector<1x512xf32>
      %149 = arith.addf %148, %147 : vector<1x512xf32>
      %cst_76 = arith.constant 1.000000e+00 : f32
      %150 = vector.broadcast %cst_76 : f32 to vector<1x512xf32>
      %151 = arith.addf %150, %147 : vector<1x512xf32>
      %152 = arith.mulf %149, %151 : vector<1x512xf32>
      %cst_77 = arith.constant 1.000000e+00 : f32
      %153 = vector.broadcast %cst_77 : f32 to vector<1x512xf32>
      %154 = arith.subf %152, %153 : vector<1x512xf32>
      %155 = arith.mulf %144, %154 : vector<1x512xf32>
      %cst_78 = arith.constant 1.000000e+00 : f32
      %156 = vector.broadcast %cst_78 : f32 to vector<1x512xf32>
      %157 = arith.addf %152, %156 : vector<1x512xf32>
      %158 = tpu.reciprocal %157 {approx = true} : vector<1x512xf32> -> vector<1x512xf32>
      %159 = arith.mulf %155, %158 : vector<1x512xf32>
      %cst_79 = arith.constant 2.000000e+01 : f32
      %160 = vector.broadcast %cst_79 : f32 to vector<1x512xf32>
      %161 = arith.cmpf ogt, %144, %160 : vector<1x512xf32>
      %162 = arith.select %161, %144, %159 : vector<1x512xi1>, vector<1x512xf32>
      %c0_80 = arith.constant 0 : index
      %c0_81 = arith.constant 0 : index
      %163 = vector.load %arg11[%c0_80, %c0_81] : memref<512x6xf32, #tpu.memory_space<vmem>>, vector<512x6xf32>
      %cst_82 = arith.constant dense<0.000000e+00> : vector<1x6xf32>
      %164 = tpu.matmul %162, %163, %cst_82 {dimension_numbers = #tpu.dot_dimension_numbers<[1], [0], [0], [1], [0, 0, 1, 1], [], []>} : vector<1x512xf32>, vector<512x6xf32>, vector<1x6xf32> -> vector<1x6xf32>
      %c0_83 = arith.constant 0 : index
      %c0_84 = arith.constant 0 : index
      %165 = vector.load %arg12[%c0_83, %c0_84] : memref<1x6xf32, #tpu.memory_space<vmem>>, vector<1x6xf32>
      %166 = arith.addf %164, %165 : vector<1x6xf32>
      %167 = vector.shape_cast %166 : vector<1x6xf32> to vector<1x1x6xf32>
      %c0_85 = arith.constant 0 : index
      %c0_86 = arith.constant 0 : index
      %c0_87 = arith.constant 0 : index
      %168 = vector.load %arg13[%c0_85, %c0_86, %c0_87] : memref<1x1x6xf32, #tpu.memory_space<vmem>>, vector<1x1x6xf32>
      tpu.vector_store %arg13[%c0_85, %c0_86, %c0_87], %167 {strides = array<i32>} : memref<1x1x6xf32, #tpu.memory_space<vmem>>, vector<1x1x6xf32>,
    } else {
    }
    return
  }
  func.func @transform_0(%arg0: i32, %arg1: i32) -> (i32, i32, i32) {
    %c0_i32 = arith.constant 0 : i32
    %c0_i32_0 = arith.constant 0 : i32
    return %arg0, %c0_i32, %arg1 : i32, i32, i32
  }
  func.func @transform_1(%arg0: i32, %arg1: i32) -> (i32, i32, i32) {
    %c0_i32 = arith.constant 0 : i32
    %c0_i32_0 = arith.constant 0 : i32
    return %arg0, %c0_i32, %arg1 : i32, i32, i32
  }
  func.func @transform_2(%arg0: i32, %arg1: i32) -> (i32, i32, i32) {
    %c0_i32 = arith.constant 0 : i32
    %c0_i32_0 = arith.constant 0 : i32
    return %arg0, %c0_i32, %arg1 : i32, i32, i32
  }
  func.func @transform_3(%arg0: i32, %arg1: i32) -> (i32, i32, i32) {
    %c0_i32 = arith.constant 0 : i32
    %c0_i32_0 = arith.constant 0 : i32
    return %arg0, %c0_i32, %arg1 : i32, i32, i32
  }
  func.func @transform_4(%arg0: i32, %arg1: i32) -> (i32, i32) {
    %c0_i32 = arith.constant 0 : i32
    %c0_i32_0 = arith.constant 0 : i32
    %c0_i32_1 = arith.constant 0 : i32
    return %c0_i32, %c0_i32_0 : i32, i32
  }
  func.func @transform_5(%arg0: i32, %arg1: i32) -> (i32, i32) {
    %c0_i32 = arith.constant 0 : i32
    %c0_i32_0 = arith.constant 0 : i32
    %c0_i32_1 = arith.constant 0 : i32
    return %c0_i32, %c0_i32_0 : i32, i32
  }
  func.func @transform_6(%arg0: i32, %arg1: i32) -> (i32, i32) {
    %c0_i32 = arith.constant 0 : i32
    %c0_i32_0 = arith.constant 0 : i32
    %c0_i32_1 = arith.constant 0 : i32
    return %c0_i32, %c0_i32_0 : i32, i32
  }
  func.func @transform_7(%arg0: i32, %arg1: i32) -> (i32, i32) {
    %c0_i32 = arith.constant 0 : i32
    %c0_i32_0 = arith.constant 0 : i32
    %c0_i32_1 = arith.constant 0 : i32
    return %c0_i32, %c0_i32_0 : i32, i32
  }
  func.func @transform_8(%arg0: i32, %arg1: i32) -> (i32, i32) {
    %c0_i32 = arith.constant 0 : i32
    %c0_i32_0 = arith.constant 0 : i32
    %c0_i32_1 = arith.constant 0 : i32
    return %c0_i32, %c0_i32_0 : i32, i32
  }
  func.func @transform_9(%arg0: i32, %arg1: i32) -> (i32, i32) {
    %c0_i32 = arith.constant 0 : i32
    %c0_i32_0 = arith.constant 0 : i32
    %c0_i32_1 = arith.constant 0 : i32
    return %c0_i32, %c0_i32_0 : i32, i32
  }
  func.func @transform_10(%arg0: i32, %arg1: i32) -> (i32, i32) {
    %c0_i32 = arith.constant 0 : i32
    %c0_i32_0 = arith.constant 0 : i32
    %c0_i32_1 = arith.constant 0 : i32
    return %c0_i32, %c0_i32_0 : i32, i32
  }
  func.func @transform_11(%arg0: i32, %arg1: i32) -> (i32, i32, i32) {
    %c0_i32 = arith.constant 0 : i32
    %c0_i32_0 = arith.constant 0 : i32
    %c0_i32_1 = arith.constant 0 : i32
    return %arg0, %c0_i32, %c0_i32_0 : i32, i32, i32
  }
}

</mosaic_0001>

<bundles_post_ra>
// kernel: tpu_custom_call.1
= control target key start
LH: loop header
LB: loop body
LE: loop exit
PB: predicated region body
PF: predicated region fallthrough
CT: control target
= control target key end

     0   :  { %16 = vsyncpa [#allocation5], 0  ;;  %s3500_s0 = inlined_call_operand.vmem [shape: f32[2,3,256], index: 0, kind: input, shape index: {}]   ;;  %s3501_s1 = inlined_call_operand.vmem [shape: f32[2,3,256], index: 1, kind: input, shape index: {}]   ;;  %s3502_s2 = inlined_call_operand.vmem [shape: f32[2,3,256], index: 2, kind: input, shape index: {}]   ;;  %s3503_s3 = inlined_call_operand.vmem [shape: f32[2,3,256], index: 3, kind: input, shape index: {}]   ;;  %s3504_s4 = inlined_call_operand.vmem [shape: f32[32,3], index: 4, kind: input, shape index: {}]   ;;  %s3505_s5 = inlined_call_operand.vmem [shape: f32[32,1], index: 5, kind: input, shape index: {}]   ;;  %s3506_s6 = inlined_call_operand.vmem [shape: f32[32,512], index: 6, kind: input, shape index: {}]   ;;  %s3507_s7 = inlined_call_operand.vmem [shape: f32[32,512], index: 7, kind: input, shape index: {}]   ;;  %s3508_s8 = inlined_call_operand.vmem [shape: f32[1,512], index: 8, kind: input, shape index: {}]   ;;  %s3509_s9 = inlined_call_operand.vmem [shape: f32[512,6], index: 9, kind: input, shape index: {}]   ;;  %s3510_s10 = inlined_call_operand.vmem [shape: f32[1,6], index: 10, kind: input, shape index: {}]   ;;  %s3511_s11 = inlined_call_operand.hbm [shape: f32[2,1,6], index: 11, kind: output, shape index: {}]  }
   0x1   :  { %18 = vsyncpa [#allocation5 + $0x1], 0  ;;  %s2600_s17 = smov 0   ;;  %s2602_s18 = smov 0  }
   0x2   :  { %s2604_s19 = smov 0   ;;  %s2606_s20 = smov 0  }
   0x3   :  { %s2608_s21 = smov 0   ;;  %s2610_s22 = smov 0  }
   0x4 LB: > { %3532 = sst [smem:[#allocation7_spill]] %s2522_s19  ;;  %s2100_s23 = sadd.s32 4294967295, %s2534_s22   ;;  %s2534_s22 = sphi %s2610_s22, %s24_s22   ;;  %s2530_s21 = sphi %s2608_s21, %s3560_s21   ;;  %s2526_s20 = sphi %s2606_s20, %s3559_s20   ;;  %s2522_s19 = sphi %s2604_s19, %s3558_s19   ;;  %s2518_s18 = sphi %s2602_s18, %s3562_s18   ;;  %s2514_s17 = sphi %s2600_s17, %s3561_s17  }
   0x5   : > { %3533 = sst [smem:[#allocation8_spill]] %s2530_s21  ;;  %s2101_s24 = sadd.s32 4294967294, %s2534_s22  }
   0x6   : > { %s36_s25 = sadd.s32 1, %s2530_s21  ;;  %s302_s26 = sadd.s32 1, %s2522_s19 }
   0x7   : > { %p38_p0 = scmp.ge.s32.totalorder %s36_s25, 2  ;;  %p312_p1 = scmp.ne.s32.totalorder %s2522_s19, %s2518_s18 }
   0x8   : > { %p313_p2 = scmp.eq.s32.totalorder %s2100_s23, 1  ;;  %p318_p3 = scmp.ne.s32.totalorder %s2518_s18, %s2514_s17 }
   0x9   : > { %s3564_s25 = smov (%p38_p0, %s36_s25), 0  ;;  %p319_p5 = scmp.eq.s32.totalorder %s2101_s24, 1 }
   0xa   : > { %3534 = sst [smem:[#allocation9_spill]] %s3564_s25  ;;  %p2640_p4 = por %p313_p2, %p312_p1 }
   0xb   : > { %s299_s28 = ssub.s32 %s2530_s21, %s3564_s25  ;;  %p2104_p6 = scmp.ge.s32.totalorder %s2534_s22, 1 }
   0xc   : > { %p300_p7 = scmp.eq.s32.totalorder %s299_s28, 0  ;;  %p2647_p8 = por %p319_p5, %p318_p3 }
   0xd   : > { %p410_p9 = scmp.lt.s32.totalorder %s2534_s22, 3 }
   0xe   : > { %s3536_s29 = scalar_select %p2647_p8, 1, 0 }
   0xf   : > { %s2653_s30 = scalar_select %p300_p7, %s2522_s19, %s302_s26  }
  0x10   : > { %3537 = sst [smem:[#allocation10_spill]] %s3536_s29  ;;  %p411_p10 = pnand %p2104_p6, %p410_p9 }
  0x11   : > { %3538 = sst [smem:[#allocation11_spill]] %s2653_s30 }
  0x12   : > { %414 = sbr.rel (%p411_p10) target bundleno = 906 (0x38a), region = 64 }
  0x17   : > { %p481_p11 = scmp.lt.s32.totalorder %s2526_s20, 1  ;;  %v3516_v0 = vmov 0.0   ;;  %v545_v1 = vld [vmem:[%s3505_s5] sm:$0xff]  ;;  %v2537_v2 = vmov 0   ;;  %v547_v3 = vld [vmem:[%s3505_s5 + $0x10] sm:$0xff]  ;;  %v546_v4 = vld [vmem:[%s3505_s5 + $0x8] sm:$0xff] }
  0x18   : > { %654 = vmatprep.mubr.f32.mxu0 %v3516_v0  ;;  %878 = vmatprep.mubr.f32.mxu1 %v3516_v0  ;;  %v548_v5 = vld [vmem:[%s3505_s5 + $0x18] sm:$0xff]  ;;  %vm585_vm0 = vcmask 1042432   ;;  %v541_v12 = vld [vmem:[%s3504_s4] sm:$0xff]  ;;  %vm572_vm1 = vcmask 23552   ;;  %v542_v15 = vld [vmem:[%s3504_s4 + $0x8] sm:$0xff]  ;;  %s478_s12 = sand.u32 1, %s2518_s18  }
  0x19   : > { %s482_s14 = scalar_select %p481_p11, %s2526_s20, 1  ;;  %2308 = vset.pattern.permute.xlu0 %v2537_v2  ;;  %2309 = vset.pattern.permute.xlu1 %v2537_v2  ;;  %v543_v16 = vld [vmem:[%s3504_s4 + $0x10] sm:$0xff]  ;;  %v544_v17 = vld [vmem:[%s3504_s4 + $0x18] sm:$0xff] }
  0x1a   : > { %552 = vperm.xlu0 %2308, %v545_v1   ;;  %562 = vperm.xlu1 %2309, %v547_v3   ;;  %s479_s16 = scalar_lea.vmem [#allocation4], %s478_s12  ;;  %s1965_s19 = scalar_lea.sflag [#allocation5], %s478_s12 }
  0x1b   : > { %s2176_s23 = sshll.u32 %s482_s14, 3  ;;  %s2173_s14 = sshll.u32 %s2526_s20, 4 }
  0x1c   : > { %s488_s21 = scalar_lea.vmem %s3500_s0, %s2176_s23  ;;  %s498_s15 = scalar_lea.vmem %s3501_s1, %s2176_s23 }
  0x1d   : > { %v549_v6 = vld [vmem:[%s488_s21] sm:$0x77]  ;;  %s508_s24 = scalar_lea.vmem %s3502_s2, %s2176_s23  ;;  %s518_s25 = scalar_lea.vmem %s3503_s3, %s2176_s23 }
  0x1e   : > { %v807_v7 = vld [vmem:[%s498_s15] sm:$0x77]  ;;  %v571_v8 = vcombine.high %v549_v6, %v549_v6  ;;  %557 = vperm.xlu0 %2308, %v546_v4   ;;  %567 = vperm.xlu1 %2309, %v548_v5   ;;  %s1975_s28 = scalar_lea.hbm %s3511_s11, %s2173_s14  ;;  %s2539_s29 = smov [#allocation4]  }
  0x1f   : > { %v809_v9 = vcombine.high %v807_v7, %v807_v7  ;;  %v1031_v10 = vld [vmem:[%s508_s24] sm:$0x77]  ;;  %s1977_s24 = sshll.u32 %s479_s16, 4  ;;  %s2462_s20 = sshll.u32 %s2539_s29, 4  ;;  %s1978_s24 = int_to_ptr.vmem [resolvable:$true] %s1977_s24  ;;  %s2463_s20 = int_to_ptr.vmem [resolvable:$false] %s2462_s20 }
  0x20   : > { %v1255_v11 = vld [vmem:[%s518_s25] sm:$0x77]  ;;  %2113 = vmatprep.subr.msk.mxu0 %vm585_vm0, %v571_v8  ;;  %v1033_v13 = vcombine.high %v1031_v10, %v1031_v10  ;;  %s2458_s21 = scalar_lea.vmem %s1978_s24, 16  ;;  %s2464_s30 = scalar_lea.vmem %s2463_s20, 32 }
  0x21   : > { %2127 = vmatprep.subr.msk.mxu1 %vm585_vm0, %v809_v9  ;;  %v1257_v14 = vcombine.high %v1255_v11, %v1255_v11  ;;  %2114 = vmatpush1.msk.msra.mxu0 %vm585_vm0, %v549_v6  ;;  %p2459_p12 = scmp.ne.s32.totalorder %s1978_s24, %s2458_s21  ;;  %p2465_p1 = scmp.lt.s32.totalorder %s1978_s24, %s2463_s20 }
  0x22   : > { %2128 = vmatpush1.msk.msra.mxu1 %vm585_vm0, %v807_v7  ;;  %2115 = vmatmul.mubr.msk.f32.vlgmr.msra.gmra.mxu0 %vm572_vm1, %v541_v12  ;;  %p2466_p2 = scmp.lt.s32.totalorder %s2464_s30, %s2458_s21 }
  0x23   : > { %2129 = vmatmul.mubr.msk.f32.vlgmr.msra.gmra.mxu1 %vm572_vm1, %v541_v12  ;;  %660 = vmatprep.mubr.f32.mxu0 %v3516_v0  ;;  %p2460_p13 = pnand %p2459_p12, %p2640_p4 }
  0x24   : > { %884 = vmatprep.mubr.f32.mxu1 %v3516_v0  ;;  %2141 = vmatprep.subr.msk.mxu0 %vm585_vm0, %v1033_v13  ;;  %p2467_p3 = por %p2466_p2, %p2465_p1 }
  0x25   : > { %2155 = vmatprep.subr.msk.mxu1 %vm585_vm0, %v1257_v14  ;;  %2142 = vmatpush1.msk.msra.mxu0 %vm585_vm0, %v1031_v10  ;;  %p2461_p0 = pneg %p2460_p13 }
  0x26   : > { %2156 = vmatpush1.msk.msra.mxu1 %vm585_vm0, %v1255_v11  ;;  %2116 = vmatmul.mubr.msk.f32.gmra.mxu0 %vm572_vm1, %v542_v15 }
  0x27   : > { %2130 = vmatmul.mubr.msk.f32.gmra.mxu1 %vm572_vm1, %v542_v15  ;;  %666 = vmatprep.mubr.f32.mxu0 %v3516_v0  ;;  %p2468_p5 = pnand %p2467_p3, %p2461_p0 }
  0x28   : > { %890 = vmatprep.mubr.f32.mxu1 %v3516_v0 }
  0x2a   : > { %2117 = vmatmul.mubr.msk.f32.gmra.mxu0 %vm572_vm1, %v543_v16 }
  0x2b   : > { %2131 = vmatmul.mubr.msk.f32.gmra.mxu1 %vm572_vm1, %v543_v16  ;;  %672 = vmatprep.mubr.f32.mxu0 %v3516_v0 }
  0x2c   : > { %896 = vmatprep.mubr.f32.mxu1 %v3516_v0 }
  0x2e   : > { %2118 = vmatmul.mubr.msk.f32.gmra.mxu0 %vm572_vm1, %v544_v17 }
  0x2f   : > { %2132 = vmatmul.mubr.msk.f32.gmra.mxu1 %vm572_vm1, %v544_v17  ;;  %1102 = vmatprep.mubr.f32.mxu0 %v3516_v0 }
  0x30   : > { %1326 = vmatprep.mubr.f32.mxu1 %v3516_v0 }
  0x32   : > { %2143 = vmatmul.mubr.msk.f32.vlgmr.msra.gmra.mxu0 %vm572_vm1, %v541_v12 }
  0x33   : > { %2157 = vmatmul.mubr.msk.f32.vlgmr.msra.gmra.mxu1 %vm572_vm1, %v541_v12  ;;  %1108 = vmatprep.mubr.f32.mxu0 %v3516_v0 }
  0x34   : > { %1332 = vmatprep.mubr.f32.mxu1 %v3516_v0 }
  0x36   : > { %2144 = vmatmul.mubr.msk.f32.gmra.mxu0 %vm572_vm1, %v542_v15 }
  0x37   : > { %2158 = vmatmul.mubr.msk.f32.gmra.mxu1 %vm572_vm1, %v542_v15  ;;  %1114 = vmatprep.mubr.f32.mxu0 %v3516_v0 }
  0x38   : > { %1338 = vmatprep.mubr.f32.mxu1 %v3516_v0 }
  0x3a   : > { %2145 = vmatmul.mubr.msk.f32.gmra.mxu0 %vm572_vm1, %v543_v16 }
  0x3b   : > { %2159 = vmatmul.mubr.msk.f32.gmra.mxu1 %vm572_vm1, %v543_v16  ;;  %1120 = vmatprep.mubr.f32.mxu0 %v3516_v0 }
  0x3c   : > { %1344 = vmatprep.mubr.f32.mxu1 %v3516_v0 }
  0x3e   : > { %2146 = vmatmul.mubr.msk.f32.gmra.mxu0 %vm572_vm1, %v544_v17 }
  0x3f   : > { %2160 = vmatmul.mubr.msk.f32.gmra.mxu1 %vm572_vm1, %v544_v17 }
  0x95   : > { %v2733_v18 = vpop.permute.xlu0 %552  ;;  %v2759_v40 = vpop.permute.xlu1 %562 }
  0x99   : > { %v2741_v27 = vpop.permute.xlu0 %557  ;;  %v2783_v2 = vpop.permute.xlu1 %567 }
  0xe2   : > { %v656_v19 = vpop.f32.mrf.mxu0 }
  0xe3   : > { %v880_v20 = vpop.f32.mrf.mxu1  ;;  %v2736_v23 = vadd.f32 %v656_v19, %v2733_v18 }
  0xe4   : > { %v658_v21 = vpop.f32.mrf.mxu0  ;;  %v2751_v33 = vadd.f32 %v880_v20, %v2733_v18 }
  0xe5   : > { %v882_v22 = vpop.f32.mrf.mxu1  ;;  %v2739_v24 = vadd.f32 %v658_v21, %v2733_v18  ;;  %v679_v30 = vmin.f32 %v2736_v23, 20.0  ;;  %vm759_vm2 = vcmp.gt.f32.partialorder %v2736_v23, 20.0 }
  0xe6   : > { %v662_v25 = vpop.f32.mrf.mxu0  ;;  %v2757_v39 = vadd.f32 %v882_v22, %v2733_v18  ;;  %v903_v42 = vmin.f32 %v2751_v33, 20.0  ;;  %vm983_vm8 = vcmp.gt.f32.partialorder %v2751_v33, 20.0 }
  0xe7   : > { %v886_v26 = vpop.f32.mrf.mxu1  ;;  %v2744_v28 = vadd.f32 %v662_v25, %v2741_v27  ;;  %v680_v34 = vmin.f32 %v2739_v24, 20.0  ;;  %v687_v38 = vmul.f32 1.442695, %v679_v30  ;;  %vm760_vm3 = vcmp.gt.f32.partialorder %v2739_v24, 20.0 }
  0xe8   : > { %v664_v29 = vpop.f32.mrf.mxu0  ;;  %v2763_v44 = vadd.f32 %v886_v26, %v2741_v27  ;;  %v904_v50 = vmin.f32 %v2757_v39, 20.0  ;;  %v911_v53 = vmul.f32 1.442695, %v903_v42  ;;  %vm984_vm9 = vcmp.gt.f32.partialorder %v2757_v39, 20.0 }
  0xe9   : > { %v2748_v31 = vadd.f32 %v664_v29, %v2741_v27  ;;  %v888_v32 = vpop.f32.mrf.mxu1  ;;  %v681_v35 = vmin.f32 %v2744_v28, 20.0  ;;  %v689_v43 = vmul.f32 1.442695, %v680_v34  ;;  %2314 = vpow2.f32 %v687_v38 }
  0xea   : > { %v668_v37 = vpop.f32.mrf.mxu0  ;;  %v2766_v46 = vadd.f32 %v888_v32, %v2741_v27  ;;  %v905_v54 = vmin.f32 %v2763_v44, 20.0  ;;  %v913_v59 = vmul.f32 1.442695, %v904_v50  ;;  %vm761_vm4 = vcmp.gt.f32.partialorder %v2744_v28, 20.0 }
  0xeb   : > { %v682_v36 = vmin.f32 %v2748_v31, 20.0  ;;  %v892_v41 = vpop.f32.mrf.mxu1  ;;  %v691_v45 = vmul.f32 1.442695, %v681_v35  ;;  %v2769_v48 = vadd.f32 %v668_v37, %v2759_v40  ;;  %2316 = vpow2.f32 %v689_v43 }
  0xec   : > { %v670_v49 = vpop.f32.mrf.mxu0  ;;  %v2773_v51 = vadd.f32 %v892_v41, %v2759_v40  ;;  %v906_v55 = vmin.f32 %v2766_v46, 20.0  ;;  %v915_v62 = vmul.f32 1.442695, %v905_v54  ;;  %vm762_vm5 = vcmp.gt.f32.partialorder %v2748_v31, 20.0 }
  0xed   : > { %v693_v47 = vmul.f32 1.442695, %v682_v36  ;;  %v894_v52 = vpop.f32.mrf.mxu1  ;;  %2318 = vpow2.f32 %v691_v45  ;;  %v2778_v56 = vadd.f32 %v670_v49, %v2759_v40  ;;  %v683_v57 = vmin.f32 %v2769_v48, 20.0 }
  0xee   : > { %3539 = vst [vmem:[#allocation12_spill] sm:$0xff] %v2773_v51  ;;  %v674_v58 = vpop.f32.mrf.mxu0  ;;  %v907_v60 = vmin.f32 %v2773_v51, 20.0  ;;  %v917_v63 = vmul.f32 1.442695, %v906_v55  ;;  %v2786_v4 = vadd.f32 %v894_v52, %v2759_v40  ;;  %vm985_vm6 = vcmp.gt.f32.partialorder %v2763_v44, 20.0 }
  0xef   : > { %3540 = vst [vmem:[#allocation13_spill] sm:$0xff] %v2778_v56  ;;  %2320 = vpow2.f32 %v693_v47  ;;  %v898_v61 = vpop.f32.mrf.mxu1  ;;  %v684_v1 = vmin.f32 %v2778_v56, 20.0  ;;  %v695_v3 = vmul.f32 1.442695, %v683_v57  ;;  %v2789_v8 = vadd.f32 %v674_v58, %v2783_v2 }
  0xf0   : > { %2322 = vpow2.f32 %v911_v53  ;;  %v676_v5 = vpop.f32.mrf.mxu0  ;;  %v919_v6 = vmul.f32 1.442695, %v907_v60  ;;  %v908_v10 = vmin.f32 %v2786_v4, 20.0  ;;  %v2793_v11 = vadd.f32 %v898_v61, %v2783_v2 }
  0xf1   : > { %2324 = vpow2.f32 %v913_v59  ;;  %v900_v7 = vpop.f32.mrf.mxu1  ;;  %v697_v9 = vmul.f32 1.442695, %v684_v1  ;;  %v2796_v13 = vadd.f32 %v676_v5, %v2783_v2  ;;  %v685_v16 = vmin.f32 %v2789_v8, 20.0 }
  0xf2   : > { %2326 = vpow2.f32 %v915_v62  ;;  %v1104_v12 = vpop.f32.mrf.mxu0  ;;  %v2800_v17 = vadd.f32 %v900_v7, %v2783_v2  ;;  %v921_v22 = vmul.f32 1.442695, %v908_v10  ;;  %v909_v25 = vmin.f32 %v2793_v11, 20.0 }
  0xf3   : > { %2328 = vpow2.f32 %v917_v63  ;;  %v1328_v14 = vpop.f32.mrf.mxu1  ;;  %v2803_v20 = vadd.f32 %v1104_v12, %v2733_v18  ;;  %v686_v32 = vmin.f32 %v2796_v13, 20.0  ;;  %v699_v35 = vmul.f32 1.442695, %v685_v16 }
  0xf4   : > { %2330 = vpow2.f32 %v695_v3  ;;  %v2807_v26 = vadd.f32 %v1328_v14, %v2733_v18  ;;  %v910_v36 = vmin.f32 %v2800_v17, 20.0  ;;  %v923_v43 = vmul.f32 1.442695, %v909_v25  ;;  %v1106_v47 = vpop.f32.mrf.mxu0 }
  0xf5   : > { %2332 = vpow2.f32 %v919_v6  ;;  %v1127_v41 = vmin.f32 %v2803_v20, 20.0  ;;  %v701_v50 = vmul.f32 1.442695, %v686_v32  ;;  %v1330_v57 = vpop.f32.mrf.mxu1  ;;  %v2814_v1 = vadd.f32 %v1106_v47, %v2733_v18 }
  0xf6   : > { %v2315_v15 = vpop.eup %2314  ;;  %2334 = vpow2.f32 %v697_v9  ;;  %v1351_v45 = vmin.f32 %v2807_v26, 20.0  ;;  %v925_v55 = vmul.f32 1.442695, %v910_v36  ;;  %v1110_v3 = vpop.f32.mrf.mxu0  ;;  %v2817_v9 = vadd.f32 %v1330_v57, %v2733_v18 }
  0xf7   : > { %v703_v30 = vadd.f32 1.0, %v2315_v15  ;;  %2336 = vpow2.f32 %v921_v22  ;;  %v1135_v60 = vmul.f32 1.442695, %v1127_v41  ;;  %vm986_vm7 = vcmp.gt.f32.partialorder %v2766_v46, 20.0 }
  0xf8   : > { %v2317_v19 = vpop.eup %2316  ;;  %2338 = vpow2.f32 %v699_v35  ;;  %v1359_v63 = vmul.f32 1.442695, %v1351_v45  ;;  %v1352_v47 = vmin.f32 %v2817_v9, 20.0  ;;  %v1112_v57 = vpop.f32.mrf.mxu0  ;;  %vm763_vm10 = vcmp.gt.f32.partialorder %v2769_v48, 20.0 }
  0xf9   : > { %v704_v34 = vadd.f32 1.0, %v2317_v19  ;;  %v711_v49 = vmul.f32 %v703_v30, %v703_v30  ;;  %2340 = vpow2.f32 %v923_v43  ;;  %v1128_v30 = vmin.f32 %v2814_v1, 20.0 }
  0xfa   : > { %v2319_v21 = vpop.eup %2318  ;;  %2342 = vpow2.f32 %v701_v50  ;;  %vm766_vm12 = vcmp.gt.f32.partialorder %v2796_v13, 20.0  ;;  %vm765_vm13 = vcmp.gt.f32.partialorder %v2789_v8, 20.0  ;;  %vm988_vm14 = vcmp.gt.f32.partialorder %v2786_v4, 20.0 }
  0xfb   : > { %v705_v38 = vadd.f32 1.0, %v2319_v21  ;;  %v712_v54 = vmul.f32 %v704_v34, %v704_v34  ;;  %v735_v6 = vadd.f32 1.0, %v711_v49  ;;  %2344 = vpow2.f32 %v925_v55 }
  0xfc   : > { %v2321_v29 = vpop.eup %2320  ;;  %2346 = vpow2.f32 %v1135_v60  ;;  %v2820_v21 = vadd.f32 %v1110_v3, %v2741_v27  ;;  %v2119_v32 = vadd.f32 -1.0, %v711_v49  ;;  %v2823_v45 = vmul.f32 1.442695, %v1128_v30 }
  0xfd   : > { %v2323_v37 = vpop.eup %2322  ;;  %v706_v42 = vadd.f32 1.0, %v2321_v29  ;;  %v713_v59 = vmul.f32 %v705_v38, %v705_v38  ;;  %v736_v14 = vadd.f32 1.0, %v712_v54  ;;  %2348 = vpow2.f32 %v1359_v63 }
  0xfe   : > { %v2325_v52 = vpop.eup %2324  ;;  %v927_v53 = vadd.f32 1.0, %v2323_v37  ;;  %3541 = vst [vmem:[#allocation14_spill] sm:$0xff] %v2820_v21  ;;  %2350 = vrcp.f32 %v735_v6  ;;  %v2120_v38 = vadd.f32 -1.0, %v712_v54  ;;  %v2827_v49 = vmul.f32 %v2119_v32, %v2736_v23 }
  0xff   : > { %v2327_v58 = vpop.eup %2326  ;;  %v714_v62 = vmul.f32 %v706_v42, %v706_v42  ;;  %v928_v7 = vadd.f32 1.0, %v2325_v52  ;;  %v737_v16 = vadd.f32 1.0, %v713_v59  ;;  %2352 = vrcp.f32 %v736_v14 }
 0x100   : > { %v2329_v61 = vpop.eup %2328  ;;  %v935_v12 = vmul.f32 %v927_v53, %v927_v53  ;;  %v929_v15 = vadd.f32 1.0, %v2327_v58  ;;  %v2121_v54 = vadd.f32 -1.0, %v713_v59  ;;  %v2833_v63 = vmul.f32 %v2120_v38, %v2739_v24 }
 0x101   : > { %v2331_v5 = vpop.eup %2330  ;;  %v930_v19 = vadd.f32 1.0, %v2329_v61  ;;  %v738_v25 = vadd.f32 1.0, %v714_v62  ;;  %v936_v18 = vmul.f32 %v928_v7, %v928_v7  ;;  %2354 = vrcp.f32 %v737_v16  ;;  %v1334_v7 = vpop.f32.mrf.mxu1 }
 0x102   : > { %v2333_v10 = vpop.eup %2332  ;;  %v707_v29 = vadd.f32 1.0, %v2331_v5  ;;  %v2133_v35 = vadd.f32 -1.0, %v935_v12  ;;  %v959_v36 = vadd.f32 1.0, %v935_v12  ;;  %v937_v37 = vmul.f32 %v929_v15, %v929_v15 }
 0x103   : > { %v2335_v22 = vpop.eup %2334  ;;  %v931_v34 = vadd.f32 1.0, %v2333_v10  ;;  %v938_v41 = vmul.f32 %v930_v19, %v930_v19  ;;  %2356 = vrcp.f32 %v738_v25  ;;  %v2134_v52 = vadd.f32 -1.0, %v936_v18  ;;  %v1116_v25 = vpop.f32.mrf.mxu0 }
 0x104   : > { %v708_v42 = vadd.f32 1.0, %v2335_v22  ;;  %v715_v43 = vmul.f32 %v707_v29, %v707_v29  ;;  %v2337_v50 = vpop.eup %2336  ;;  %v960_v53 = vadd.f32 1.0, %v936_v18  ;;  %v2830_v58 = vmul.f32 %v2133_v35, %v2751_v33 }
 0x105   : > { %v939_v55 = vmul.f32 %v931_v34, %v931_v34  ;;  %2358 = vrcp.f32 %v959_v36  ;;  %v961_v60 = vadd.f32 1.0, %v937_v37  ;;  %v2339_v61 = vpop.eup %2338  ;;  %v2135_v3 = vadd.f32 -1.0, %v937_v37  ;;  %v1336_v37 = vpop.f32.mrf.mxu1 }
 0x106   : > { %v962_v5 = vadd.f32 1.0, %v938_v41  ;;  %v716_v6 = vmul.f32 %v708_v42, %v708_v42  ;;  %v2122_v10 = vadd.f32 -1.0, %v714_v62  ;;  %v2136_v12 = vadd.f32 -1.0, %v938_v41  ;;  %v2341_v16 = vpop.eup %2340 }
 0x107   : > { %v2123_v14 = vadd.f32 -1.0, %v715_v43  ;;  %v932_v15 = vadd.f32 1.0, %v2337_v50  ;;  %v2836_v19 = vmul.f32 %v2134_v52, %v2757_v39  ;;  %2360 = vrcp.f32 %v960_v53  ;;  %v2343_v29 = vpop.eup %2342 }
 0x108   : > { %v739_v22 = vadd.f32 1.0, %v715_v43  ;;  %v2137_v59 = vadd.f32 -1.0, %v939_v55  ;;  %v729_v30 = vmul.f32 %v2121_v54, %v2744_v28  ;;  %2362 = vrcp.f32 %v961_v60  ;;  %v2345_v34 = vpop.eup %2344  ;;  %v1118_v60 = vpop.f32.mrf.mxu0 }
 0x109   : > { %v963_v32 = vadd.f32 1.0, %v939_v55  ;;  %v709_v18 = vadd.f32 1.0, %v2339_v61  ;;  %v2840_v62 = vmul.f32 %v2135_v3, %v2763_v44  ;;  %2364 = vrcp.f32 %v962_v5  ;;  %v2347_v38 = vpop.eup %2346 }
 0x10a   : > { %v2124_v35 = vadd.f32 -1.0, %v716_v6  ;;  %v740_v36 = vadd.f32 1.0, %v716_v6  ;;  %v730_v41 = vmul.f32 %v2122_v10, %v2748_v31  ;;  %v2844_v42 = vmul.f32 %v2136_v12, %v2766_v46  ;;  %v2849_v52 = vpop.eup %2348 }
 0x10b   : > { %v2847_v43 = vmul.f32 %v2123_v14, %v2769_v48  ;;  %v940_v50 = vmul.f32 %v932_v15, %v932_v15  ;;  %2366 = vrcp.f32 %v739_v22  ;;  %v2852_v53 = vmul.f32 %v2137_v59, %v2773_v51  ;;  %v2351_v61 = vpop.eup %2350  ;;  %v1340_v15 = vpop.f32.mrf.mxu1 }
 0x10c   : > { %v933_v55 = vadd.f32 1.0, %v2341_v16  ;;  %v2855_v54 = vadd.f32 %v1112_v57, %v2741_v27  ;;  %2368 = vrcp.f32 %v963_v32  ;;  %v717_v3 = vmul.f32 %v709_v18, %v709_v18  ;;  %v2353_v10 = vpop.eup %2352 }
 0x10d   : > { %3542 = vst [vmem:[#allocation15_spill] sm:$0xff] %v2852_v53  ;;  %v1361_v5 = vmul.f32 1.442695, %v1352_v47  ;;  %v1129_v6 = vmin.f32 %v2820_v21, 20.0  ;;  %v2861_v12 = vmul.f32 %v2124_v35, %v2778_v56  ;;  %2370 = vrcp.f32 %v740_v36 }
 0x10e   : > { %3543 = vst [vmem:[#allocation16_spill] sm:$0xff] %v2855_v54  ;;  %v710_v14 = vadd.f32 1.0, %v2343_v29  ;;  %v2864_v57 = vadd.f32 %v1334_v7, %v2741_v27  ;;  %v2355_v16 = vpop.eup %2354  ;;  %v2138_v22 = vadd.f32 -1.0, %v940_v50  ;;  %v964_v59 = vadd.f32 1.0, %v940_v50  ;;  %v1122_v7 = vpop.f32.mrf.mxu0 }
 0x10f   : > { %v934_v32 = vadd.f32 1.0, %v2345_v34  ;;  %v2868_v47 = vadd.f32 %v1336_v37, %v2741_v27  ;;  %v941_v0 = vmul.f32 %v933_v55, %v933_v55  ;;  %v2870_v21 = vadd.f32 1.0, %v2347_v38  ;;  %v1342_v38 = vpop.f32.mrf.mxu1 }
 0x110   : > { %v2357_v18 = vpop.eup %2356  ;;  %2372 = vpow2.f32 %v2823_v45  ;;  %v1130_v29 = vmin.f32 %v2855_v54, 20.0  ;;  %v2874_v35 = vadd.f32 -1.0, %v717_v3  ;;  %v1139_v36 = vmul.f32 1.442695, %v1129_v6 }
 0x111   : > { %2374 = vpow2.f32 %v1361_v5  ;;  %v751_v51 = vmul.f32 %v2351_v61, %v2827_v49  ;;  %v741_v34 = vadd.f32 1.0, %v717_v3  ;;  %v1353_v27 = vmin.f32 %v2864_v57, 20.0  ;;  %v1124_v3 = vpop.f32.mrf.mxu0 }
 0x112   : > { %v2877_v50 = vpop.eup %2358  ;;  %v2881_v37 = vadd.f32 %v1116_v25, %v2759_v40  ;;  %v752_v45 = vmul.f32 %v2353_v10, %v2833_v63  ;;  %v718_v55 = vmul.f32 %v710_v14, %v710_v14  ;;  %v1354_v54 = vmin.f32 %v2868_v47, 20.0  ;;  %v1346_v14 = vpop.f32.mrf.mxu1 }
 0x113   : > { %v753_v53 = vmul.f32 %v2355_v16, %v729_v30  ;;  %v754_v56 = vmul.f32 %v2357_v18, %v730_v41  ;;  %2376 = vrcp.f32 %v964_v59  ;;  %v2885_v5 = vmul.f32 %v934_v32, %v934_v32 }
 0x114   : > { %3544 = vst [vmem:[#allocation17_spill] sm:$0xff] %v2881_v37  ;;  %v1141_v49 = vmul.f32 1.442695, %v1130_v29  ;;  %v2888_v61 = vadd.f32 %v1118_v60, %v2759_v40  ;;  %v2890_v6 = vpop.eup %2360  ;;  %v2893_v25 = vmul.f32 %v2138_v22, %v2786_v4  ;;  %2378 = vpow2.f32 %v1139_v36 }
 0x115   : > { %v767_v63 = vsel %vm759_vm2, %v2736_v23, %v751_v51  ;;  %v768_v30 = vsel %vm760_vm3, %v2739_v24, %v752_v45  ;;  %v2363_v41 = vpop.eup %2362  ;;  %v1363_v10 = vmul.f32 1.442695, %v1353_v27  ;;  %v1131_v60 = vmin.f32 %v2881_v37, 20.0  ;;  %v1348_v27 = vpop.f32.mrf.mxu1 }
 0x116   : > { %v791_v16 = vadd.f32 %v768_v30, %v767_v63  ;;  %v2365_v59 = vpop.eup %2364  ;;  %v1365_v22 = vmul.f32 1.442695, %v1354_v54  ;;  %v2904_v32 = vadd.f32 %v1124_v3, %v2783_v2  ;;  %v2909_v23 = vsel %vm761_vm4, %v2744_v28, %v753_v53 }
 0x117   : > { %v2912_v24 = vsel %vm762_vm5, %v2748_v31, %v754_v56  ;;  %v2139_v51 = vadd.f32 -1.0, %v941_v0  ;;  %2380 = vpow2.f32 %v1141_v49  ;;  %v1132_v18 = vmin.f32 %v2888_v61, 20.0 }
 0x118   : > { %792 = vadd.xlane.f32.xlu0 %v791_v16  ;;  %v794_v29 = vadd.f32 %v2912_v24, %v2909_v23  ;;  %v2917_v54 = vpop.eup %2366  ;;  %2382 = vrcp.f32 %v741_v34  ;;  %v2920_v36 = vadd.f32 %v1340_v15, %v2759_v40  ;;  %v2923_v28 = vadd.f32 %v1122_v7, %v2783_v2 }
 0x119   : > { %v977_v31 = vmul.f32 %v2363_v41, %v2840_v62  ;;  %v2926_v56 = vpop.eup %2368  ;;  %2384 = vpow2.f32 %v1363_v10  ;;  %v1143_v53 = vmul.f32 1.442695, %v1131_v60  ;;  %v775_v45 = vmax.f32 %v767_v63, %v768_v30 }
 0x11a   : > { %795 = vadd.xlane.f32.xlu1 %v794_v29  ;;  %v978_v49 = vmul.f32 %v2365_v59, %v2844_v42  ;;  %v2929_v3 = vpop.eup %2370  ;;  %v965_v34 = vadd.f32 1.0, %v941_v0  ;;  %v742_v16 = vadd.f32 1.0, %v718_v55  ;;  %2386 = vpow2.f32 %v1365_v22 }
 0x11b   : > { %v1134_v15 = vmin.f32 %v2904_v32, 20.0  ;;  %v1145_v7 = vmul.f32 1.442695, %v1132_v18  ;;  %v2933_v37 = vadd.f32 %v1342_v38, %v2759_v40  ;;  %v1133_v63 = vmin.f32 %v2923_v28, 20.0 }
 0x11c   : > { %776 = vmax.xlane.f32.xlu0 %v775_v45  ;;  %v2939_v42 = vadd.f32 %v1348_v27, %v2783_v2  ;;  %v2942_v0 = vsel %vm985_vm6, %v2763_v44, %v977_v31  ;;  %v2945_v30 = vsel %vm986_vm7, %v2766_v46, %v978_v49  ;;  %v2126_v40 = vadd.f32 -1.0, %v718_v55 }
 0x11d   : > { %v2373_v62 = vpop.eup %2372  ;;  %2388 = vpow2.f32 %v1143_v53  ;;  %v1355_v38 = vmin.f32 %v2920_v36, 20.0  ;;  %v1018_v10 = vadd.f32 %v2945_v30, %v2942_v0  ;;  %v966_v60 = vadd.f32 1.0, %v2885_v5 }
 0x11e   : > { %3545 = vst [vmem:[#allocation18_spill] sm:$0xff] %v2939_v42  ;;  %v2375_v41 = vpop.eup %2374  ;;  %v1159_v59 = vmul.f32 %v2870_v21, %v2870_v21  ;;  %v1375_v22 = vadd.f32 1.0, %v2849_v52  ;;  %v1149_v44 = vmul.f32 1.442695, %v1134_v15  ;;  %v1152_v18 = vadd.f32 1.0, %v2373_v62 }
 0x11f   : > { %2390 = vpow2.f32 %v1145_v7  ;;  %v1356_v46 = vmin.f32 %v2933_v37, 20.0  ;;  %v2956_v55 = vadd.f32 %v1346_v14, %v2783_v2  ;;  %1019 = vadd.xlane.f32.xlu1 %v1018_v10  ;;  %v1376_v31 = vadd.f32 1.0, %v2375_v41 }
 0x120   : > { %v2958_v29 = vpop.eup %2376  ;;  %2392 = vrcp.f32 %v742_v16  ;;  %v1147_v53 = vmul.f32 1.442695, %v1133_v63  ;;  %v1358_v27 = vmin.f32 %v2939_v42, 20.0  ;;  %v2965_v52 = vmul.f32 %v2874_v35, %v2789_v8 }
 0x121   : > { %3546 = vst [vmem:[#allocation19_spill] sm:$0xff] %v2956_v55  ;;  %v2379_v21 = vpop.eup %2378  ;;  %v2968_v2 = vmul.f32 %v2139_v51, %v2793_v11  ;;  %2394 = vrcp.f32 %v965_v34  ;;  %v1367_v14 = vmul.f32 1.442695, %v1355_v38  ;;  %v2140_v45 = vadd.f32 -1.0, %v2885_v5 }
 0x122   : > { %v1183_v49 = vadd.f32 1.0, %v1159_v59  ;;  %v1383_v16 = vmul.f32 %v1375_v22, %v1375_v22  ;;  %2396 = vpow2.f32 %v1149_v44  ;;  %v1160_v15 = vmul.f32 %v1152_v18, %v1152_v18 }
 0x123   : > { %2398 = vrcp.f32 %v966_v60  ;;  %v1369_v7 = vmul.f32 1.442695, %v1356_v46  ;;  %v1357_v62 = vmin.f32 %v2956_v55, 20.0  ;;  %v2973_v41 = vmul.f32 %v2126_v40, %v2796_v13 }
 0x124   : > { %v2381_v63 = vpop.eup %2380  ;;  %v1384_v35 = vmul.f32 %v1376_v31, %v1376_v31  ;;  %2400 = vpow2.f32 %v1147_v53  ;;  %v1373_v51 = vmul.f32 1.442695, %v1358_v27  ;;  %v1153_v34 = vadd.f32 1.0, %v2379_v21 }
 0x125   : > { %v2383_v10 = vpop.eup %2382  ;;  %2402 = vpow2.f32 %v1367_v14  ;;  %v975_v5 = vmul.f32 %v2877_v50, %v2830_v58  ;;  %v976_v38 = vmul.f32 %v2890_v6, %v2836_v19  ;;  %v2147_v22 = vadd.f32 -1.0, %v1159_v59 }
 0x126   : > { %v2385_v60 = vpop.eup %2384  ;;  %2404 = vrcp.f32 %v1183_v49  ;;  %v2161_v44 = vadd.f32 -1.0, %v1383_v16  ;;  %v1407_v18 = vadd.f32 1.0, %v1383_v16  ;;  %v1184_v40 = vadd.f32 1.0, %v1160_v15 }
 0x127   : > { %v2387_v46 = vpop.eup %2386  ;;  %v1154_v55 = vadd.f32 1.0, %v2381_v63  ;;  %2406 = vpow2.f32 %v1369_v7  ;;  %v1371_v31 = vmul.f32 1.442695, %v1357_v62  ;;  %v2148_v53 = vadd.f32 -1.0, %v1160_v15 }
 0x128   : > { %v2162_v27 = vadd.f32 -1.0, %v1384_v35  ;;  %v1408_v21 = vadd.f32 1.0, %v1384_v35  ;;  %2408 = vpow2.f32 %v1373_v51  ;;  %v1161_v14 = vmul.f32 %v1153_v34, %v1153_v34 }
 0x129   : > { %v1377_v42 = vadd.f32 1.0, %v2385_v60  ;;  %v991_v58 = vsel %vm983_vm8, %v2751_v33, %v975_v5  ;;  %v992_v19 = vsel %vm984_vm9, %v2757_v39, %v976_v38  ;;  %v2986_v6 = vmul.f32 %v2140_v45, %v2800_v17 }
 0x12a   : > { %v2389_v50 = vpop.eup %2388  ;;  %2410 = vrcp.f32 %v1407_v18  ;;  %v1378_v59 = vadd.f32 1.0, %v2387_v46  ;;  %v1015_v49 = vadd.f32 %v992_v19, %v991_v58  ;;  %v2989_v16 = vmul.f32 %v2147_v22, %v2803_v20 }
 0x12b   : > { %v2992_v15 = vmul.f32 %v2161_v44, %v2807_v26  ;;  %2412 = vrcp.f32 %v1184_v40  ;;  %v2994_v7 = vmul.f32 %v1154_v55, %v1154_v55  ;;  %v2997_v62 = vmul.f32 %v2148_v53, %v2814_v1 }
 0x12c   : > { %v2391_v33 = vpop.eup %2390  ;;  %v3000_v39 = vmul.f32 %v2162_v27, %v2817_v9  ;;  %2414 = vpow2.f32 %v1371_v31  ;;  %1016 = vadd.xlane.f32.xlu0 %v1015_v49  ;;  %v1002_v45 = vmax.f32 %v2942_v0, %v2945_v30  ;;  %v1185_v35 = vadd.f32 1.0, %v1161_v14 }
 0x12d   : > { %v2393_v63 = vpop.eup %2392  ;;  %2416 = vrcp.f32 %v1408_v21  ;;  %v3004_v51 = vmul.f32 %v1377_v42, %v1377_v42  ;;  %v1155_v34 = vadd.f32 1.0, %v2389_v50  ;;  %v3006_v5 = vmul.f32 %v1378_v59, %v1378_v59  ;;  %v3547_v42 = vld [vmem:[#allocation13_spill] sm:$0xff] }
 0x12e   : > { %v2395_v55 = vpop.eup %2394  ;;  %1003 = vmax.xlane.f32.xlu1 %v1002_v45  ;;  %v999_v38 = vmax.f32 %v991_v58, %v992_v19  ;;  %v755_v60 = vmul.f32 %v2917_v54, %v2847_v43  ;;  %v756_v22 = vmul.f32 %v2929_v3, %v2861_v12  ;;  %v1186_v0 = vadd.f32 1.0, %v2994_v7 }
 0x12f   : > { %v2397_v44 = vpop.eup %2396  ;;  %v1156_v30 = vadd.f32 1.0, %v2391_v33  ;;  %vm764_vm11 = vcmp.gt.f32.partialorder %v3547_v42, 20.0  ;;  %v757_v31 = vmul.f32 %v2383_v10, %v2965_v52  ;;  %v758_v43 = vmul.f32 %v2393_v63, %v2973_v41  ;;  %v3548_v33 = vld [vmem:[#allocation15_spill] sm:$0xff] }
 0x130   : > { %v2399_v18 = vpop.eup %2398  ;;  %1000 = vmax.xlane.f32.xlu0 %v999_v38  ;;  %v771_v46 = vsel %vm763_vm10, %v2769_v48, %v755_v60  ;;  %v772_v40 = vsel %vm764_vm11, %v3547_v42, %v756_v22  ;;  %v3019_v12 = vadd.f32 -1.0, %v1161_v14  ;;  %v1409_v3 = vadd.f32 1.0, %v3004_v51 }
 0x131   : > { %v2401_v54 = vpop.eup %2400  ;;  %v797_v53 = vadd.f32 %v772_v40, %v771_v46  ;;  %v1410_v21 = vadd.f32 1.0, %v3006_v5  ;;  %v1158_v58 = vadd.f32 1.0, %v2397_v44  ;;  %v778_v48 = vmax.f32 %v2909_v23, %v2912_v24 }
 0x132   : > { %v2403_v27 = vpop.eup %2402  ;;  %v774_v19 = vsel %vm766_vm12, %v2796_v13, %v758_v43  ;;  %2418 = vrcp.f32 %v1186_v0  ;;  %v3027_v41 = vmul.f32 %v1156_v30, %v1156_v30  ;;  %v980_v10 = vmul.f32 %v2958_v29, %v2893_v25 }
 0x133   : > { %v2405_v52 = vpop.eup %2404  ;;  %798 = vadd.xlane.f32.xlu1 %v797_v53  ;;  %2420 = vrcp.f32 %v1185_v35  ;;  %v3032_v50 = vmul.f32 %v1155_v34, %v1155_v34  ;;  %v1157_v59 = vadd.f32 1.0, %v2401_v54  ;;  %v773_v23 = vsel %vm765_vm13, %v2789_v8, %v757_v31 }
 0x134   : > { %v2407_v14 = vpop.eup %2406  ;;  %779 = vmax.xlane.f32.xlu0 %v778_v48  ;;  %2422 = vrcp.f32 %v1409_v3  ;;  %v1379_v13 = vadd.f32 1.0, %v2403_v27  ;;  %v800_v49 = vadd.f32 %v774_v19, %v773_v23  ;;  %v979_v45 = vmul.f32 %v2926_v56, %v3548_v33  ;;  %v3549_v56 = vld [vmem:[#allocation12_spill] sm:$0xff]  ;;  %v3551_v33 = vld [vmem:[#allocation14_spill] sm:$0xff] }
 0x135   : > { %v2409_v24 = vpop.eup %2408  ;;  %v3037_v63 = vmul.f32 %v1158_v58, %v1158_v58  ;;  %v781_v38 = vmax.f32 %v771_v46, %v772_v40  ;;  %v982_v25 = vmul.f32 %v2399_v18, %v2986_v6  ;;  %2424 = vrcp.f32 %v1410_v21 }
 0x136   : > { %v1188_v35 = vadd.f32 1.0, %v3027_v41  ;;  %v1380_v34 = vadd.f32 1.0, %v2407_v14  ;;  %v996_v8 = vsel %vm988_vm14, %v2786_v4, %v980_v10  ;;  %v1187_v22 = vadd.f32 1.0, %v3032_v50 }
 0x137   : > { %v2411_v29 = vpop.eup %2410  ;;  %801 = vadd.xlane.f32.xlu1 %v800_v49  ;;  %v3044_v44 = vmul.f32 %v1157_v59, %v1157_v59  ;;  %vm987_vm15 = vcmp.gt.f32.partialorder %v3549_v56, 20.0  ;;  %v981_v0 = vmul.f32 %v2395_v55, %v2968_v2  ;;  %v1382_v6 = vadd.f32 1.0, %v2409_v24 }
 0x138   : > { %v2413_v60 = vpop.eup %2412  ;;  %782 = vmax.xlane.f32.xlu0 %v781_v38  ;;  %v784_v42 = vmax.f32 %v773_v23, %v774_v19  ;;  %v995_v18 = vsel %vm987_vm15, %v3549_v56, %v979_v45  ;;  %vm990_vm0 = vcmp.gt.f32.partialorder %v2800_v17, 20.0  ;;  %v2150_v4 = vadd.f32 -1.0, %v2994_v7 }
 0x139   : > { %v2415_v30 = vpop.eup %2414  ;;  %v1190_v40 = vadd.f32 1.0, %v3037_v63  ;;  %v1021_v31 = vadd.f32 %v996_v8, %v995_v18  ;;  %v998_v43 = vsel %vm990_vm0, %v2800_v17, %v982_v25  ;;  %2426 = vrcp.f32 %v1188_v35 }
 0x13a   : > { %v2417_v46 = vpop.eup %2416  ;;  %v3053_v54 = vmul.f32 %v1380_v34, %v1380_v34  ;;  %vm989_vm1 = vcmp.gt.f32.partialorder %v2793_v11, 20.0  ;;  %v1200_v2 = vmul.f32 %v2413_v60, %v2997_v62  ;;  %v3057_v55 = vmul.f32 %v1379_v13, %v1379_v13  ;;  %v3550_v62 = vld [vmem:[#allocation16_spill] sm:$0xff] }
 0x13b   : > { %785 = vmax.xlane.f32.xlu1 %v784_v42  ;;  %v1189_v3 = vadd.f32 1.0, %v3044_v44  ;;  %v1381_v53 = vadd.f32 1.0, %v2415_v30  ;;  %v997_v7 = vsel %vm989_vm1, %v2793_v11, %v981_v0  ;;  %2428 = vrcp.f32 %v1187_v22 }
 0x13c   : > { %1022 = vadd.xlane.f32.xlu0 %v1021_v31  ;;  %v3061_v27 = vmul.f32 %v1382_v6, %v1382_v6  ;;  %v1024_v17 = vadd.f32 %v998_v43, %v997_v7  ;;  %v1199_v21 = vmul.f32 %v2405_v52, %v2989_v16  ;;  %v2164_v58 = vadd.f32 -1.0, %v3006_v5 }
 0x13d   : > { %2430 = vrcp.f32 %v1190_v40  ;;  %v1005_v48 = vmax.f32 %v995_v18, %v996_v8  ;;  %vm1208_vm2 = vcmp.gt.f32.partialorder %v2814_v1, 20.0  ;;  %v1178_v19 = vmul.f32 %v2150_v4, %v3550_v62 }
 0x13e   : > { %v1412_v10 = vadd.f32 1.0, %v3053_v54  ;;  %v1216_v14 = vsel %vm1208_vm2, %v2814_v1, %v1200_v2  ;;  %v1424_v11 = vmul.f32 %v2417_v46, %v3000_v39  ;;  %v1411_v23 = vadd.f32 1.0, %v3057_v55  ;;  %v3553_v2 = vld [vmem:[#allocation17_spill] sm:$0xff] }
 0x13f   : > { %1025 = vadd.xlane.f32.xlu1 %v1024_v17  ;;  %v2419_v59 = vpop.eup %2418  ;;  %2432 = vrcp.f32 %v1189_v3  ;;  %v3071_v16 = vmul.f32 %v1381_v53, %v1381_v53  ;;  %vm1207_vm3 = vcmp.gt.f32.partialorder %v2803_v20, 20.0  ;;  %v1414_v52 = vadd.f32 1.0, %v3061_v27 }
 0x140   : > { %1006 = vmax.xlane.f32.xlu0 %v1005_v48  ;;  %v2421_v5 = vpop.eup %2420  ;;  %v1008_v24 = vmax.f32 %v997_v7, %v998_v43  ;;  %v1215_v13 = vsel %vm1207_vm3, %v2803_v20, %v1199_v21  ;;  %v1423_v49 = vmul.f32 %v2411_v29, %v2992_v15  ;;  %v1177_v39 = vmul.f32 %v3019_v12, %v3551_v33 }
 0x141   : > { %v2423_v1 = vpop.eup %2422  ;;  %v2163_v45 = vadd.f32 -1.0, %v3004_v51  ;;  %v1223_v38 = vmax.f32 %v1215_v13, %v1216_v14  ;;  %vm1432_vm4 = vcmp.gt.f32.partialorder %v2817_v9, 20.0  ;;  %v1402_v25 = vmul.f32 %v2164_v58, %v2868_v47 }
 0x142   : > { %2434 = vrcp.f32 %v1412_v10  ;;  %v1440_v35 = vsel %vm1432_vm4, %v2817_v9, %v1424_v11  ;;  %v1202_v34 = vmul.f32 %v2419_v59, %v1178_v19  ;;  %v2425_v8 = vpop.eup %2424  ;;  %v2152_v20 = vadd.f32 -1.0, %v3027_v41 }
 0x143   : > { %1009 = vmax.xlane.f32.xlu1 %v1008_v24  ;;  %2436 = vrcp.f32 %v1411_v23  ;;  %v1413_v15 = vadd.f32 1.0, %v3071_v16  ;;  %vm1431_vm5 = vcmp.gt.f32.partialorder %v2807_v26, 20.0  ;;  %v1239_v51 = vadd.f32 %v1216_v14, %v1215_v13 }
 0x144   : > { %1224 = vmax.xlane.f32.xlu0 %v1223_v38  ;;  %2438 = vrcp.f32 %v1414_v52  ;;  %v1439_v12 = vsel %vm1431_vm5, %v2807_v26, %v1423_v49  ;;  %v1201_v29 = vmul.f32 %v2421_v5, %v1177_v39  ;;  %vm1210_vm6 = vcmp.gt.f32.partialorder %v3550_v62, 20.0 }
 0x145   : > { %v1447_v60 = vmax.f32 %v1439_v12, %v1440_v35  ;;  %vm524_vm7 = vcmask 7168   ;;  %v1401_v9 = vmul.f32 %v2163_v45, %v2864_v57  ;;  %v2151_v22 = vadd.f32 -1.0, %v3032_v50 }
 0x146   : > { %v1218_v41 = vsel %vm1210_vm6, %v3550_v62, %v1202_v34  ;;  %v1426_v56 = vmul.f32 %v2425_v8, %v1402_v25  ;;  %v3552_v0 = vmov 0.0   ;;  %v2538_v26 = vmov -inf   ;;  %v2427_v50 = vpop.eup %2426 }
 0x147   : > { %1240 = vadd.xlane.f32.xlu1 %v1239_v51  ;;  %529 = vst.msk [vmem:[#allocation3] sm:$0xff] %vm524_vm7, %v3552_v0  ;;  %530 = vst.msk [vmem:[#allocation3 + $0x8] sm:$0xff] %vm524_vm7, %v3552_v0  ;;  %2440 = vrcp.f32 %v1413_v15  ;;  %v2154_v30 = vadd.f32 -1.0, %v3037_v63  ;;  %vm1209_vm8 = vcmp.gt.f32.partialorder %v3551_v33, 20.0  ;;  %v1180_v6 = vmul.f32 %v2152_v20, %v2888_v61 }
 0x148   : > { %531 = vst.msk [vmem:[#allocation3 + $0x10] sm:$0xff] %vm524_vm7, %v3552_v0  ;;  %532 = vst.msk [vmem:[#allocation3 + $0x18] sm:$0xff] %vm524_vm7, %v3552_v0  ;;  %1448 = vmax.xlane.f32.xlu0 %v1447_v60  ;;  %v1463_v42 = vadd.f32 %v1440_v35, %v1439_v12  ;;  %v1217_v18 = vsel %vm1209_vm8, %v3551_v33, %v1201_v29  ;;  %v1425_v46 = vmul.f32 %v2423_v1, %v1401_v9  ;;  %v2429_v4 = vpop.eup %2428  ;;  %v3554_v1 = vld [vmem:[#allocation18_spill] sm:$0xff]  ;;  %v3555_v35 = vld [vmem:[#allocation19_spill] sm:$0xff] }
 0x149   : > { %525 = vst.msk [vmem:[#allocation2] sm:$0xff] %vm524_vm7, %v2538_v26  ;;  %526 = vst.msk [vmem:[#allocation2 + $0x8] sm:$0xff] %vm524_vm7, %v2538_v26  ;;  %v2153_v40 = vadd.f32 -1.0, %v3044_v44  ;;  %v1242_v31 = vadd.f32 %v1218_v41, %v1217_v18  ;;  %vm1434_vm9 = vcmp.gt.f32.partialorder %v2868_v47, 20.0  ;;  %v1179_v3 = vmul.f32 %v2151_v22, %v3553_v2 }
 0x14a   : > { %527 = vst.msk [vmem:[#allocation2 + $0x10] sm:$0xff] %vm524_vm7, %v2538_v26  ;;  %528 = vst.msk [vmem:[#allocation2 + $0x18] sm:$0xff] %vm524_vm7, %v2538_v26  ;;  %v2431_v43 = vpop.eup %2430  ;;  %v1442_v63 = vsel %vm1434_vm9, %v2868_v47, %v1426_v56  ;;  %v1204_v53 = vmul.f32 %v2427_v50, %v1180_v6  ;;  %v1182_v7 = vmul.f32 %v2154_v30, %v2904_v32  ;;  %vm1433_vm10 = vcmp.gt.f32.partialorder %v2864_v57, 20.0 }
 0x14b   : > { %1464 = vadd.xlane.f32.xlu1 %v1463_v42  ;;  %v2166_v21 = vadd.f32 -1.0, %v3053_v54  ;;  %v1226_v58 = vmax.f32 %v1217_v18, %v1218_v41  ;;  %v1441_v44 = vsel %vm1433_vm10, %v2864_v57, %v1425_v46  ;;  %v1203_v48 = vmul.f32 %v2429_v4, %v1179_v3 }
 0x14c   : > { %1243 = vadd.xlane.f32.xlu0 %v1242_v31  ;;  %v2433_v17 = vpop.eup %2432  ;;  %v1181_v62 = vmul.f32 %v2153_v40, %v2923_v28  ;;  %v1466_v19 = vadd.f32 %v1442_v63, %v1441_v44  ;;  %vm1212_vm11 = vcmp.gt.f32.partialorder %v2888_v61, 20.0  ;;  %v1206_v10 = vmul.f32 %v2431_v43, %v1182_v7 }
 0x14d   : > { %v2165_v47 = vadd.f32 -1.0, %v3057_v55  ;;  %v1220_v14 = vsel %vm1212_vm11, %v2888_v61, %v1204_v53  ;;  %v2168_v59 = vadd.f32 -1.0, %v3061_v27  ;;  %vm1211_vm12 = vcmp.gt.f32.partialorder %v3553_v2, 20.0 }
 0x14e   : > { %v1205_v54 = vmul.f32 %v2433_v17, %v1181_v62  ;;  %v1404_v23 = vmul.f32 %v2166_v21, %v2933_v37  ;;  %v1450_v5 = vmax.f32 %v1441_v44, %v1442_v63  ;;  %v1219_v52 = vsel %vm1211_vm12, %v3553_v2, %v1203_v48  ;;  %v537_v2 = vld [vmem:[#allocation3] sm:$0xff]  ;;  %v538_v44 = vld [vmem:[#allocation3 + $0x8] sm:$0xff] }
 0x14f   : > { %1227 = vmax.xlane.f32.xlu1 %v1226_v58  ;;  %v2435_v11 = vpop.eup %2434  ;;  %vm1214_vm13 = vcmp.gt.f32.partialorder %v2904_v32, 20.0  ;;  %v2167_v55 = vadd.f32 -1.0, %v3071_v16  ;;  %v1245_v13 = vadd.f32 %v1220_v14, %v1219_v52  ;;  %v1403_v27 = vmul.f32 %v2165_v47, %v2920_v36 }
 0x150   : > { %1467 = vadd.xlane.f32.xlu0 %v1466_v19  ;;  %v2437_v57 = vpop.eup %2436  ;;  %v1222_v61 = vsel %vm1214_vm13, %v2904_v32, %v1206_v10  ;;  %vm1213_vm14 = vcmp.gt.f32.partialorder %v2923_v28, 20.0  ;;  %v1428_v49 = vmul.f32 %v2435_v11, %v1404_v23  ;;  %v1406_v33 = vmul.f32 %v2168_v59, %v3554_v1  ;;  %v533_v31 = vld [vmem:[#allocation2] sm:$0xff]  ;;  %v534_v19 = vld [vmem:[#allocation2 + $0x8] sm:$0xff] }
 0x151   : > { %v2439_v24 = vpop.eup %2438  ;;  %v1221_v39 = vsel %vm1213_vm14, %v2923_v28, %v1205_v54  ;;  %v1427_v25 = vmul.f32 %v2437_v57, %v1403_v27  ;;  %v1405_v34 = vmul.f32 %v2167_v55, %v3555_v35  ;;  %v1229_v16 = vmax.f32 %v1219_v52, %v1220_v14 }
 0x152   : > { %v1248_v38 = vadd.f32 %v1222_v61, %v1221_v39  ;;  %vm1436_vm15 = vcmp.gt.f32.partialorder %v2933_v37, 20.0  ;;  %v1430_v32 = vmul.f32 %v2439_v24, %v1406_v33  ;;  %vm1435_vm0 = vcmp.gt.f32.partialorder %v2920_v36, 20.0 }
 0x153   : > { %1451 = vmax.xlane.f32.xlu1 %v1450_v5  ;;  %v1444_v8 = vsel %vm1436_vm15, %v2933_v37, %v1428_v49  ;;  %v1232_v15 = vmax.f32 %v1221_v39, %v1222_v61  ;;  %v1443_v51 = vsel %vm1435_vm0, %v2920_v36, %v1427_v25  ;;  %vm1438_vm1 = vcmp.gt.f32.partialorder %v3554_v1, 20.0 }
 0x154   : > { %1246 = vadd.xlane.f32.xlu0 %v1245_v13  ;;  %v2441_v45 = vpop.eup %2440  ;;  %v1469_v28 = vadd.f32 %v1444_v8, %v1443_v51  ;;  %v1446_v12 = vsel %vm1438_vm1, %v3554_v1, %v1430_v32  ;;  %vm1437_vm2 = vcmp.gt.f32.partialorder %v3555_v35, 20.0  ;;  %v1453_v37 = vmax.f32 %v1443_v51, %v1444_v8  ;;  %v539_v1 = vld [vmem:[#allocation3 + $0x10] sm:$0xff] }
 0x155   : > { %v1429_v20 = vmul.f32 %v2441_v45, %v1405_v34 }
 0x157   : > { %1249 = vadd.xlane.f32.xlu1 %v1248_v38  ;;  %v1445_v29 = vsel %vm1437_vm2, %v3555_v35, %v1429_v20  ;;  %v540_v35 = vld [vmem:[#allocation3 + $0x18] sm:$0xff] }
 0x158   : > { %1230 = vmax.xlane.f32.xlu0 %v1229_v16  ;;  %v1472_v60 = vadd.f32 %v1446_v12, %v1445_v29  ;;  %v1456_v9 = vmax.f32 %v1445_v29, %v1446_v12  ;;  %v535_v16 = vld [vmem:[#allocation2 + $0x10] sm:$0xff] }
 0x15b   : > { %1233 = vmax.xlane.f32.xlu1 %v1232_v15 }
 0x15c   : > { %1470 = vadd.xlane.f32.xlu0 %v1469_v28 }
 0x15f   : > { %1473 = vadd.xlane.f32.xlu1 %v1472_v60  ;;  %v536_v60 = vld [vmem:[#allocation2 + $0x18] sm:$0xff] }
 0x160   : > { %1454 = vmax.xlane.f32.xlu0 %v1453_v37 }
 0x164   : > { %1457 = vmax.xlane.f32.xlu0 %v1456_v9 }
 0x1a1   : > { %v793_v22 = vpop.xlane.xlu0 %792 }
 0x1a2   : > { %v803_v17 = vadd.f32 %v793_v22, %v537_v2 }
 0x1a3   : > { %v796_v41 = vpop.xlane.xlu1 %795 }
 0x1a4   : > { %v804_v14 = vadd.f32 %v796_v41, %v538_v44  ;;  %v1787_v44 = vld [vmem:[%s3509_s9 + $0xf0] sm:$0xff] }
 0x1a5   : > { %v777_v36 = vpop.xlane.xlu0 %776 }
 0x1a6   : > { %v787_v3 = vmax.f32 %v533_v31, %v777_v36 }
 0x1a8   : > { %v1020_v56 = vpop.xlane.xlu1 %1019 }
 0x1a9   : > { %v1028_v23 = vadd.f32 %v1020_v56, %v804_v14  ;;  %v1770_v14 = vld [vmem:[%s3509_s9 + $0x68] sm:$0xff] }
 0x1b5   : > { %v1017_v0 = vpop.xlane.xlu0 %1016 }
 0x1b6   : > { %v1027_v48 = vadd.f32 %v1017_v0, %v803_v17  ;;  %v1820_v17 = vld [vmem:[%s3509_s9 + $0x1f8] sm:$0xff] }
 0x1b7   : > { %v1004_v26 = vpop.xlane.xlu1 %1003  ;;  %2215 = vmatprep.subr.mxu1 %v1820_v17 }
 0x1b9   : > { %v1001_v50 = vpop.xlane.xlu0 %1000 }
 0x1ba   : > { %v1011_v7 = vmax.f32 %v787_v3, %v1001_v50 }
 0x1bc   : > { %v799_v30 = vpop.xlane.xlu1 %798 }
 0x1bd   : > { %v780_v6 = vpop.xlane.xlu0 %779  ;;  %v805_v25 = vadd.f32 %v799_v30, %v539_v1  ;;  %v1782_v1 = vld [vmem:[%s3509_s9 + $0xc8] sm:$0xff] }
 0x1be   : > { %v788_v59 = vmax.f32 %v534_v19, %v780_v6  ;;  %v1803_v19 = vld [vmem:[%s3509_s9 + $0x170] sm:$0xff] }
 0x1c0   : > { %v802_v42 = vpop.xlane.xlu1 %801  ;;  %v1012_v24 = vmax.f32 %v788_v59, %v1004_v26  ;;  %v1785_v59 = vld [vmem:[%s3509_s9 + $0xe0] sm:$0xff] }
 0x1c1   : > { %v783_v18 = vpop.xlane.xlu0 %782  ;;  %v806_v20 = vadd.f32 %v802_v42, %v540_v35  ;;  %v1765_v35 = vld [vmem:[%s3509_s9 + $0x40] sm:$0xff] }
 0x1c2   : > { %v789_v51 = vmax.f32 %v535_v16, %v783_v18  ;;  %v1780_v16 = vld [vmem:[%s3509_s9 + $0xb8] sm:$0xff] }
 0x1c4   : > { %v3139_v46 = vpop.xlane.xlu1 %785 }
 0x1c5   : > { %v1023_v4 = vpop.xlane.xlu0 %1022  ;;  %v790_v0 = vmax.f32 %v536_v60, %v3139_v46  ;;  %v1810_v60 = vld [vmem:[%s3509_s9 + $0x1a8] sm:$0xff] }
 0x1c6   : > { %v1029_v8 = vadd.f32 %v1023_v4, %v805_v25  ;;  %v1813_v25 = vld [vmem:[%s3509_s9 + $0x1c0] sm:$0xff] }
 0x1c8   : > { %v1026_v40 = vpop.xlane.xlu1 %1025 }
 0x1c9   : > { %v1007_v43 = vpop.xlane.xlu0 %1006  ;;  %v1030_v37 = vadd.f32 %v1026_v40, %v806_v20  ;;  %v1796_v20 = vld [vmem:[%s3509_s9 + $0x138] sm:$0xff] }
 0x1ca   : > { %v1013_v22 = vmax.f32 %v789_v51, %v1007_v43  ;;  %v1811_v51 = vld [vmem:[%s3509_s9 + $0x1b0] sm:$0xff] }
 0x1cc   : > { %v3141_v63 = vpop.xlane.xlu1 %1009 }
 0x1cd   : > { %v1225_v53 = vpop.xlane.xlu0 %1224  ;;  %v1014_v42 = vmax.f32 %v790_v0, %v3141_v63  ;;  %v1788_v63 = vld [vmem:[%s3509_s9 + $0xf8] sm:$0xff] }
 0x1ce   : > { %v1235_v21 = vmax.f32 %v1011_v7, %v1225_v53  ;;  %2180 = vmatprep.subr.mxu0 %v1788_v63  ;;  %v1776_v0 = vld [vmem:[%s3509_s9 + $0x98] sm:$0xff] }
 0x1d0   : > { %v1241_v58 = vpop.xlane.xlu1 %1240 }
 0x1d1   : > { %v1449_v62 = vpop.xlane.xlu0 %1448  ;;  %v1251_v47 = vadd.f32 %v1241_v58, %v1027_v48  ;;  %v1804_v58 = vld [vmem:[%s3509_s9 + $0x178] sm:$0xff]  ;;  %v1819_v48 = vld [vmem:[%s3509_s9 + $0x1f0] sm:$0xff] }
 0x1d2   : > { %v1459_v10 = vmax.f32 %v1235_v21, %v1449_v62  ;;  %v1772_v21 = vld [vmem:[%s3509_s9 + $0x78] sm:$0xff]  ;;  %2216 = vmatpush3.msra.mxu1 %v1804_v58  ;;  %v1771_v62 = vld [vmem:[%s3509_s9 + $0x70] sm:$0xff] }
 0x1d3   : > { %2181 = vmatpush3.msra.mxu0 %v1772_v21  ;;  %2217 = vmatprep.subr.mxu1 %v1819_v48  ;;  %v1685_v21 = vlaneseq  ;;  %v1592_v48 = vld [vmem:[%s3507_s7 + $0x8] sm:$0xff] }
 0x1d4   : > { %1480 = vst.msk [vmem:[#allocation2] sm:$0xff] %vm524_vm7, %v1459_v10  ;;  %v1465_v11 = vpop.xlane.xlu1 %1464  ;;  %v1786_v10 = vld [vmem:[%s3509_s9 + $0xe8] sm:$0xff]  ;;  %2182 = vmatprep.subr.mxu0 %v1787_v44  ;;  %2218 = vmatpush3.msra.mxu1 %v1803_v19  ;;  %v1591_v44 = vld [vmem:[%s3507_s7] sm:$0xff] }
 0x1d5   : > { %v1475_v54 = vadd.f32 %v1465_v11, %v1251_v47  ;;  %v1244_v57 = vpop.xlane.xlu0 %1243  ;;  %v1818_v47 = vld [vmem:[%s3509_s9 + $0x1e8] sm:$0xff]  ;;  %2183 = vmatpush3.msra.mxu0 %v1771_v62  ;;  %v3345_v58 = vshrl.u32 %v1685_v21, 7  ;;  %v1593_v62 = vld [vmem:[%s3507_s7 + $0x10] sm:$0xff]  ;;  %v1595_v19 = vld [vmem:[%s3507_s7 + $0x20] sm:$0xff] }
 0x1d6   : > { %v1252_v5 = vadd.f32 %v1244_v57, %v1028_v23  ;;  %v1802_v11 = vld [vmem:[%s3509_s9 + $0x168] sm:$0xff]  ;;  %2184 = vmatprep.subr.mxu0 %v1786_v10  ;;  %2219 = vmatprep.subr.mxu1 %v1818_v47  ;;  %v1769_v57 = vld [vmem:[%s3509_s9 + $0x60] sm:$0xff]  ;;  %v1597_v47 = vld [vmem:[%s3507_s7 + $0x30] sm:$0xff] }
 0x1d7   : > { %1484 = vst.msk [vmem:[#allocation3] sm:$0xff] %vm524_vm7, %v1475_v54  ;;  %v1817_v54 = vld [vmem:[%s3509_s9 + $0x1e0] sm:$0xff]  ;;  %2185 = vmatpush3.msra.mxu0 %v1770_v14  ;;  %2220 = vmatpush3.msra.mxu1 %v1802_v11  ;;  %v1596_v10 = vld [vmem:[%s3507_s7 + $0x28] sm:$0xff]  ;;  %v1598_v14 = vld [vmem:[%s3507_s7 + $0x38] sm:$0xff] }
 0x1d8   : > { %v1228_v52 = vpop.xlane.xlu1 %1227  ;;  %v1801_v23 = vld [vmem:[%s3509_s9 + $0x160] sm:$0xff]  ;;  %2186 = vmatprep.subr.mxu0 %v1785_v59  ;;  %2221 = vmatprep.subr.mxu1 %v1817_v54  ;;  %v1594_v54 = vld [vmem:[%s3507_s7 + $0x18] sm:$0xff]  ;;  %v1605_v21 = vld [vmem:[%s3507_s7 + $0x70] sm:$0xff] }
 0x1d9   : > { %v1468_v55 = vpop.xlane.xlu0 %1467  ;;  %v1236_v61 = vmax.f32 %v1012_v24, %v1228_v52  ;;  %v1816_v52 = vld [vmem:[%s3509_s9 + $0x1d8] sm:$0xff]  ;;  %2187 = vmatpush3.msra.mxu0 %v1769_v57  ;;  %2222 = vmatpush3.msra.mxu1 %v1801_v23  ;;  %v1503_v59 = vld [vmem:[%s3506_s6] sm:$0xff]  ;;  %v1508_v23 = vld [vmem:[%s3506_s6 + $0x28] sm:$0xff] }
 0x1da   : > { %v1476_v13 = vadd.f32 %v1468_v55, %v1252_v5  ;;  %v1784_v5 = vld [vmem:[%s3509_s9 + $0xd8] sm:$0xff]  ;;  %2223 = vmatprep.subr.mxu1 %v1816_v52  ;;  %v1507_v57 = vld [vmem:[%s3506_s6 + $0x20] sm:$0xff] }
 0x1db   : > { %v1491_v27 = vld [vmem:[#allocation2] sm:$0xff]  ;;  %v1768_v24 = vld [vmem:[%s3509_s9 + $0x58] sm:$0xff]  ;;  %2188 = vmatprep.subr.mxu0 %v1784_v5  ;;  %v1509_v5 = vld [vmem:[%s3506_s6 + $0x30] sm:$0xff] }
 0x1dc   : > { %1485 = vst.msk [vmem:[#allocation3 + $0x8] sm:$0xff] %vm524_vm7, %v1476_v13  ;;  %1521 = vperm.xlu1 %2309, %v1491_v27   ;;  %v1452_v49 = vpop.xlane.xlu1 %1451  ;;  %v1800_v55 = vld [vmem:[%s3509_s9 + $0x158] sm:$0xff]  ;;  %v1783_v13 = vld [vmem:[%s3509_s9 + $0xd0] sm:$0xff]  ;;  %2189 = vmatpush3.msra.mxu0 %v1768_v24 }
 0x1dd   : > { %v1460_v33 = vmax.f32 %v1236_v61, %v1452_v49  ;;  %v1247_v39 = vpop.xlane.xlu0 %1246  ;;  %v1815_v61 = vld [vmem:[%s3509_s9 + $0x1d0] sm:$0xff]  ;;  %2224 = vmatpush3.msra.mxu1 %v1800_v55  ;;  %2190 = vmatprep.subr.mxu0 %v1783_v13  ;;  %v1510_v52 = vld [vmem:[%s3506_s6 + $0x38] sm:$0xff]  ;;  %v1691_v55 = vsub.s32 1, %v3345_v58  ;;  %v1699_v13 = vsub.s32 3, %v3345_v58 }
 0x1de   : > { %v1495_v45 = vld [vmem:[#allocation3] sm:$0xff]  ;;  %v1253_v28 = vadd.f32 %v1247_v39, %v1029_v8  ;;  %v1767_v27 = vld [vmem:[%s3509_s9 + $0x50] sm:$0xff]  ;;  %2225 = vmatprep.subr.mxu1 %v1815_v61  ;;  %v1766_v39 = vld [vmem:[%s3509_s9 + $0x48] sm:$0xff]  ;;  %v1687_v61 = vsub.s32 0, %v3345_v58 }
 0x1df   : > { %1481 = vst.msk [vmem:[#allocation2 + $0x8] sm:$0xff] %vm524_vm7, %v1460_v33  ;;  %v1499_v38 = vmul.f32 0.0009765625, %v1495_v45  ;;  %v1799_v49 = vld [vmem:[%s3509_s9 + $0x150] sm:$0xff]  ;;  %v1814_v33 = vld [vmem:[%s3509_s9 + $0x1c8] sm:$0xff]  ;;  %2191 = vmatpush3.msra.mxu0 %v1767_v27  ;;  %v1764_v8 = vld [vmem:[%s3509_s9 + $0x38] sm:$0xff]  ;;  %v1695_v27 = vsub.s32 2, %v3345_v58 }
 0x1e0   : > { %v1250_v34 = vpop.xlane.xlu1 %1249  ;;  %v1798_v45 = vld [vmem:[%s3509_s9 + $0x148] sm:$0xff]  ;;  %2226 = vmatpush3.msra.mxu1 %v1799_v49  ;;  %2192 = vmatprep.subr.mxu0 %v1782_v1  ;;  %v1505_v1 = vld [vmem:[%s3506_s6 + $0x10] sm:$0xff] }
 0x1e1   : > { %v1231_v32 = vpop.xlane.xlu0 %1230  ;;  %1609 = vperm.xlu1 %2309, %v1499_v38   ;;  %v1254_v56 = vadd.f32 %v1250_v34, %v1030_v37  ;;  %v1781_v38 = vld [vmem:[%s3509_s9 + $0xc0] sm:$0xff]  ;;  %2227 = vmatprep.subr.mxu1 %v1814_v33  ;;  %v1762_v37 = vld [vmem:[%s3509_s9 + $0x28] sm:$0xff]  ;;  %v1506_v33 = vld [vmem:[%s3506_s6 + $0x18] sm:$0xff] }
 0x1e2   : > { %v1237_v26 = vmax.f32 %v1013_v22, %v1231_v32  ;;  %v1797_v34 = vld [vmem:[%s3509_s9 + $0x140] sm:$0xff]  ;;  %2193 = vmatpush3.msra.mxu0 %v1766_v39  ;;  %2228 = vmatpush3.msra.mxu1 %v1798_v45  ;;  %v1812_v32 = vld [vmem:[%s3509_s9 + $0x1b8] sm:$0xff]  ;;  %v1504_v49 = vld [vmem:[%s3506_s6 + $0x8] sm:$0xff] }
 0x1e3   : > { %v1496_v15 = vld [vmem:[#allocation3 + $0x8] sm:$0xff]  ;;  %2194 = vmatprep.subr.mxu0 %v1781_v38  ;;  %2229 = vmatprep.subr.mxu1 %v1813_v25  ;;  %v1777_v22 = vld [vmem:[%s3509_s9 + $0xa0] sm:$0xff] }
 0x1e4   : > { %v1234_v12 = vpop.xlane.xlu1 %1233  ;;  %v1500_v29 = vmul.f32 0.0009765625, %v1496_v15  ;;  %2195 = vmatpush3.msra.mxu0 %v1765_v35  ;;  %2230 = vmatpush3.msra.mxu1 %v1797_v34  ;;  %v1779_v15 = vld [vmem:[%s3509_s9 + $0xb0] sm:$0xff] }
 0x1e5   : > { %v1471_v9 = vpop.xlane.xlu0 %1470  ;;  %v1238_v4 = vmax.f32 %v1014_v42, %v1234_v12  ;;  %2196 = vmatprep.subr.mxu0 %v1780_v16  ;;  %2231 = vmatprep.subr.mxu1 %v1812_v32  ;;  %v1795_v12 = vld [vmem:[%s3509_s9 + $0x130] sm:$0xff] }
 0x1e6   : > { %v1477_v41 = vadd.f32 %v1471_v9, %v1253_v28  ;;  %1614 = vperm.xlu1 %2309, %v1500_v29   ;;  %v1492_v36 = vld [vmem:[#allocation2 + $0x8] sm:$0xff]  ;;  %v1763_v28 = vld [vmem:[%s3509_s9 + $0x30] sm:$0xff]  ;;  %2197 = vmatpush3.msra.mxu0 %v1764_v8  ;;  %v1599_v8 = vld [vmem:[%s3507_s7 + $0x40] sm:$0xff] }
 0x1e7   : > { %1526 = vperm.xlu0 %2308, %v1492_v36   ;;  %2232 = vmatpush3.msra.mxu1 %v1796_v20  ;;  %v1778_v29 = vld [vmem:[%s3509_s9 + $0xa8] sm:$0xff]  ;;  %v1761_v36 = vld [vmem:[%s3509_s9 + $0x20] sm:$0xff]  ;;  %v1807_v42 = vld [vmem:[%s3509_s9 + $0x190] sm:$0xff] }
 0x1e8   : > { %1486 = vst.msk [vmem:[#allocation3 + $0x10] sm:$0xff] %vm524_vm7, %v1477_v41  ;;  %v1474_v50 = vpop.xlane.xlu1 %1473  ;;  %2198 = vmatprep.subr.mxu0 %v1779_v15  ;;  %2233 = vmatprep.subr.mxu1 %v1811_v51  ;;  %v1794_v9 = vld [vmem:[%s3509_s9 + $0x128] sm:$0xff]  ;;  %v1809_v41 = vld [vmem:[%s3509_s9 + $0x1a0] sm:$0xff] }
 0x1e9   : > { %v1478_v30 = vadd.f32 %v1474_v50, %v1254_v56  ;;  %v1455_v6 = vpop.xlane.xlu0 %1454  ;;  %2199 = vmatpush3.msra.mxu0 %v1763_v28  ;;  %2234 = vmatpush3.msra.mxu1 %v1795_v12  ;;  %v1793_v56 = vld [vmem:[%s3509_s9 + $0x120] sm:$0xff]  ;;  %v1760_v50 = vld [vmem:[%s3509_s9 + $0x18] sm:$0xff]  ;;  %v1600_v12 = vld [vmem:[%s3507_s7 + $0x48] sm:$0xff] }
 0x1ea   : > { %v1461_v18 = vmax.f32 %v1237_v26, %v1455_v6  ;;  %2200 = vmatprep.subr.mxu0 %v1778_v29  ;;  %2235 = vmatprep.subr.mxu1 %v1810_v60  ;;  %v1808_v26 = vld [vmem:[%s3509_s9 + $0x198] sm:$0xff]  ;;  %v1775_v6 = vld [vmem:[%s3509_s9 + $0x90] sm:$0xff] }
 0x1eb   : > { %1487 = vst.msk [vmem:[#allocation3 + $0x18] sm:$0xff] %vm524_vm7, %v1478_v30  ;;  %2201 = vmatpush3.msra.mxu0 %v1762_v37  ;;  %2236 = vmatpush3.msra.mxu1 %v1794_v9  ;;  %v1792_v30 = vld [vmem:[%s3509_s9 + $0x118] sm:$0xff]  ;;  %v1601_v29 = vld [vmem:[%s3507_s7 + $0x50] sm:$0xff] }
 0x1ec   : > { %1482 = vst.msk [vmem:[#allocation2 + $0x10] sm:$0xff] %vm524_vm7, %v1461_v18  ;;  %2202 = vmatprep.subr.mxu0 %v1777_v22  ;;  %2237 = vmatprep.subr.mxu1 %v1809_v41  ;;  %v1759_v18 = vld [vmem:[%s3509_s9 + $0x10] sm:$0xff]  ;;  %v1602_v60 = vld [vmem:[%s3507_s7 + $0x58] sm:$0xff] }
 0x1ed   : > { %v1458_v40 = vpop.xlane.xlu0 %1457  ;;  %2203 = vmatpush3.msra.mxu0 %v1761_v36  ;;  %2238 = vmatpush3.msra.mxu1 %v1793_v56  ;;  %v1511_v36 = vld [vmem:[%s3506_s6 + $0x40] sm:$0xff] }
 0x1ee   : > { %v1462_v31 = vmax.f32 %v1238_v4, %v1458_v40  ;;  %2204 = vmatprep.subr.mxu0 %v1776_v0  ;;  %2239 = vmatprep.subr.mxu1 %v1808_v26  ;;  %v1791_v4 = vld [vmem:[%s3509_s9 + $0x110] sm:$0xff]  ;;  %v1774_v40 = vld [vmem:[%s3509_s9 + $0x88] sm:$0xff] }
 0x1ef   : > { %v1497_v43 = vld [vmem:[#allocation3 + $0x10] sm:$0xff]  ;;  %2205 = vmatpush3.msra.mxu0 %v1760_v50  ;;  %2240 = vmatpush3.msra.mxu1 %v1792_v30 }
 0x1f0   : > { %1483 = vst.msk [vmem:[#allocation2 + $0x18] sm:$0xff] %vm524_vm7, %v1462_v31  ;;  %v1501_v46 = vmul.f32 0.0009765625, %v1497_v43  ;;  %v1806_v31 = vld [vmem:[%s3509_s9 + $0x188] sm:$0xff]  ;;  %2206 = vmatprep.subr.mxu0 %v1775_v6  ;;  %2241 = vmatprep.subr.mxu1 %v1807_v42  ;;  %v1513_v42 = vld [vmem:[%s3506_s6 + $0x50] sm:$0xff]  ;;  %vm1962_vm7 = vcmask 40960  }
 0x1f1   : > { %v1758_v43 = vld [vmem:[%s3509_s9 + $0x8] sm:$0xff]  ;;  %2207 = vmatpush3.msra.mxu0 %v1759_v18  ;;  %2242 = vmatpush3.msra.mxu1 %v1791_v4  ;;  %v1514_v18 = vld [vmem:[%s3506_s6 + $0x58] sm:$0xff] }
 0x1f2   : > { %1619 = vperm.xlu1 %2309, %v1501_v46   ;;  %v1498_v2 = vld [vmem:[#allocation3 + $0x18] sm:$0xff]  ;;  %v1790_v46 = vld [vmem:[%s3509_s9 + $0x108] sm:$0xff]  ;;  %2208 = vmatprep.subr.mxu0 %v1774_v40 }
 0x1f3   : > { %v1493_v3 = vld [vmem:[#allocation2 + $0x10] sm:$0xff]  ;;  %v1502_v53 = vmul.f32 0.0009765625, %v1498_v2  ;;  %v1773_v2 = vld [vmem:[%s3509_s9 + $0x80] sm:$0xff]  ;;  %2243 = vmatprep.subr.mxu1 %v1806_v31  ;;  %2209 = vmatpush3.msra.mxu0 %v1758_v43  ;;  %v1512_v6 = vld [vmem:[%s3506_s6 + $0x48] sm:$0xff] }
 0x1f4   : > { %1531 = vperm.xlu0 %2308, %v1493_v3   ;;  %v1805_v3 = vld [vmem:[%s3509_s9 + $0x180] sm:$0xff]  ;;  %2244 = vmatpush3.msra.mxu1 %v1790_v46 }
 0x1f5   : > { %2210 = vmatprep.subr.mxu0 %v1773_v2  ;;  %2245 = vmatprep.subr.mxu1 %v1805_v3  ;;  %v1603_v46 = vld [vmem:[%s3507_s7 + $0x60] sm:$0xff] }
 0x1f6   : > { %1624 = vperm.xlu1 %2309, %v1502_v53   ;;  %v1757_v53 = vld [vmem:[%s3509_s9] sm:$0xff] }
 0x1f7   : > { %v1494_v7 = vld [vmem:[#allocation2 + $0x18] sm:$0xff]  ;;  %2211 = vmatpush3.msra.mxu0 %v1757_v53 }
 0x1f8   : > { %1536 = vperm.xlu0 %2308, %v1494_v7   ;;  %v1789_v7 = vld [vmem:[%s3509_s9 + $0x100] sm:$0xff] }
 0x1f9   : > { %2246 = vmatpush3.msra.mxu1 %v1789_v7 }
 0x257   : > { %v1522_v63 = vpop.permute.xlu1 %1521 }
 0x258   : > { %v1539_v37 = vmul.f32 %v1522_v63, %v1503_v59  ;;  %v1540_v9 = vmul.f32 %v1522_v63, %v1504_v49  ;;  %v1541_v22 = vmul.f32 %v1522_v63, %v1505_v1  ;;  %v1542_v41 = vmul.f32 %v1522_v63, %v1506_v33  ;;  %v1516_v49 = vld [vmem:[%s3506_s6 + $0x68] sm:$0xff]  ;;  %v1517_v1 = vld [vmem:[%s3506_s6 + $0x70] sm:$0xff]  ;;  %v1518_v33 = vld [vmem:[%s3506_s6 + $0x78] sm:$0xff] }
 0x25c   : > { %v1610_v17 = vpop.permute.xlu1 %1609 }
 0x25d   : > { %v1627_v35 = vmul.f32 %v1610_v17, %v1591_v44  ;;  %v1628_v34 = vmul.f32 %v1610_v17, %v1592_v48  ;;  %v1629_v16 = vmul.f32 %v1610_v17, %v1593_v62  ;;  %v1630_v32 = vmul.f32 %v1610_v17, %v1594_v54  ;;  %v1604_v17 = vld [vmem:[%s3507_s7 + $0x68] sm:$0xff]  ;;  %v1606_v44 = vld [vmem:[%s3507_s7 + $0x78] sm:$0xff] }
 0x261   : > { %v1615_v11 = vpop.permute.xlu1 %1614 }
 0x262   : > { %v1527_v24 = vpop.permute.xlu0 %1526  ;;  %v1631_v39 = vmul.f32 %v1615_v11, %v1595_v19  ;;  %v1632_v45 = vmul.f32 %v1615_v11, %v1596_v10  ;;  %v1633_v38 = vmul.f32 %v1615_v11, %v1597_v47  ;;  %v1634_v25 = vmul.f32 %v1615_v11, %v1598_v14 }
 0x263   : > { %v1543_v20 = vmul.f32 %v1527_v24, %v1507_v57  ;;  %v1544_v15 = vmul.f32 %v1527_v24, %v1508_v23  ;;  %v1545_v51 = vmul.f32 %v1527_v24, %v1509_v5  ;;  %v1546_v28 = vmul.f32 %v1527_v24, %v1510_v52  ;;  %v1515_v57 = vld [vmem:[%s3506_s6 + $0x60] sm:$0xff] }
 0x264   : > { %v1643_v56 = vadd.f32 %v1631_v39, %v1627_v35  ;;  %v1652_v0 = vadd.f32 %v1632_v45, %v1628_v34  ;;  %v1661_v26 = vadd.f32 %v1633_v38, %v1629_v16  ;;  %v1670_v50 = vadd.f32 %v1634_v25, %v1630_v32 }
 0x265   : > { %v1555_v2 = vadd.f32 %v1543_v20, %v1539_v37  ;;  %v1564_v3 = vadd.f32 %v1544_v15, %v1540_v9  ;;  %v1573_v53 = vadd.f32 %v1545_v51, %v1541_v22  ;;  %v1582_v7 = vadd.f32 %v1546_v28, %v1542_v41 }
 0x26d   : > { %v1620_v30 = vpop.permute.xlu1 %1619 }
 0x26e   : > { %v1635_v4 = vmul.f32 %v1620_v30, %v1599_v8  ;;  %v1636_v40 = vmul.f32 %v1620_v30, %v1600_v12  ;;  %v1637_v31 = vmul.f32 %v1620_v30, %v1601_v29  ;;  %v1638_v43 = vmul.f32 %v1620_v30, %v1602_v60 }
 0x26f   : > { %v1532_v63 = vpop.permute.xlu0 %1531 }
 0x270   : > { %v1547_v48 = vmul.f32 %v1532_v63, %v1511_v36  ;;  %v1548_v62 = vmul.f32 %v1532_v63, %v1512_v6  ;;  %v1549_v19 = vmul.f32 %v1532_v63, %v1513_v42  ;;  %v1550_v10 = vmul.f32 %v1532_v63, %v1514_v18 }
 0x271   : > { %v1644_v47 = vadd.f32 %v1643_v56, %v1635_v4  ;;  %v1653_v14 = vadd.f32 %v1652_v0, %v1636_v40  ;;  %v1662_v11 = vadd.f32 %v1661_v26, %v1637_v31  ;;  %v1671_v59 = vadd.f32 %v1670_v50, %v1638_v43  ;;  %v1625_v54 = vpop.permute.xlu1 %1624 }
 0x272   : > { %v1639_v23 = vmul.f32 %v1625_v54, %v1603_v46  ;;  %v1640_v5 = vmul.f32 %v1625_v54, %v1604_v17  ;;  %v1641_v52 = vmul.f32 %v1625_v54, %v1605_v21  ;;  %v1642_v24 = vmul.f32 %v1625_v54, %v1606_v44 }
 0x273   : > { %v1556_v39 = vadd.f32 %v1555_v2, %v1547_v48  ;;  %v1565_v45 = vadd.f32 %v1564_v3, %v1548_v62  ;;  %v1574_v38 = vadd.f32 %v1573_v53, %v1549_v19  ;;  %v1583_v25 = vadd.f32 %v1582_v7, %v1550_v10  ;;  %v1537_v35 = vpop.permute.xlu0 %1536  ;;  %v1683_v10 = vld [vmem:[%s3508_s8] sm:$0xf] }
 0x274   : > { %v1645_v34 = vadd.f32 %v1644_v47, %v1639_v23  ;;  %v1654_v16 = vadd.f32 %v1653_v14, %v1640_v5  ;;  %v1663_v32 = vadd.f32 %v1662_v11, %v1641_v52  ;;  %v1672_v8 = vadd.f32 %v1671_v59, %v1642_v24 }
 0x275   : > { %v1551_v20 = vmul.f32 %v1537_v35, %v1515_v57  ;;  %v1552_v15 = vmul.f32 %v1537_v35, %v1516_v49  ;;  %v1553_v51 = vmul.f32 %v1537_v35, %v1517_v1  ;;  %v1554_v28 = vmul.f32 %v1537_v35, %v1518_v33 }
 0x276   : > { %v1646_v12 = vrot.slane %v1645_v34, 4  ;;  %v1655_v29 = vrot.slane %v1654_v16, 4  ;;  %v1664_v60 = vrot.slane %v1663_v32, 4  ;;  %v1673_v37 = vrot.slane %v1672_v8, 4 }
 0x277   : > { %v1557_v9 = vadd.f32 %v1556_v39, %v1551_v20  ;;  %v1566_v22 = vadd.f32 %v1565_v45, %v1552_v15  ;;  %v1575_v41 = vadd.f32 %v1574_v38, %v1553_v51  ;;  %v1584_v36 = vadd.f32 %v1583_v25, %v1554_v28 }
 0x278   : > { %v1647_v56 = vadd.f32 %v1646_v12, %v1645_v34  ;;  %v1656_v0 = vadd.f32 %v1655_v29, %v1654_v16  ;;  %v1665_v26 = vadd.f32 %v1664_v60, %v1663_v32  ;;  %v1674_v50 = vadd.f32 %v1673_v37, %v1672_v8 }
 0x279   : > { %v1558_v30 = vrot.slane %v1557_v9, 4  ;;  %v1567_v6 = vrot.slane %v1566_v22, 4  ;;  %v1576_v42 = vrot.slane %v1575_v41, 4  ;;  %v1585_v18 = vrot.slane %v1584_v36, 4 }
 0x27a   : > { %v1648_v4 = vrot.slane %v1647_v56, 2  ;;  %v1657_v40 = vrot.slane %v1656_v0, 2  ;;  %v1666_v31 = vrot.slane %v1665_v26, 2  ;;  %v1675_v43 = vrot.slane %v1674_v50, 2 }
 0x27b   : > { %v1559_v46 = vadd.f32 %v1558_v30, %v1557_v9  ;;  %v1568_v2 = vadd.f32 %v1567_v6, %v1566_v22  ;;  %v1577_v3 = vadd.f32 %v1576_v42, %v1575_v41  ;;  %v1586_v53 = vadd.f32 %v1585_v18, %v1584_v36 }
 0x27c   : > { %v1649_v7 = vadd.f32 %v1648_v4, %v1647_v56  ;;  %v1658_v63 = vadd.f32 %v1657_v40, %v1656_v0  ;;  %v1667_v17 = vadd.f32 %v1666_v31, %v1665_v26  ;;  %v1676_v21 = vadd.f32 %v1675_v43, %v1674_v50 }
 0x27d   : > { %v1560_v44 = vrot.slane %v1559_v46, 2  ;;  %v1569_v48 = vrot.slane %v1568_v2, 2  ;;  %v1578_v62 = vrot.slane %v1577_v3, 2  ;;  %v1587_v19 = vrot.slane %v1586_v53, 2 }
 0x27e   : > { %v1650_v47 = vrot.slane %v1649_v7, 1  ;;  %v1659_v14 = vrot.slane %v1658_v63, 1  ;;  %v1668_v11 = vrot.slane %v1667_v17, 1  ;;  %v1677_v59 = vrot.slane %v1676_v21, 1 }
 0x27f   : > { %v1561_v54 = vadd.f32 %v1560_v44, %v1559_v46  ;;  %v1570_v57 = vadd.f32 %v1569_v48, %v1568_v2  ;;  %v1579_v23 = vadd.f32 %v1578_v62, %v1577_v3  ;;  %v1588_v5 = vadd.f32 %v1587_v19, %v1586_v53 }
 0x280   : > { %v1692_v52 = vrot.slane %v1683_v10, %v1691_v55  ;;  %v1700_v24 = vrot.slane %v1683_v10, %v1699_v13  ;;  %v1688_v49 = vrot.slane %v1683_v10, %v1687_v61  ;;  %v1696_v1 = vrot.slane %v1683_v10, %v1695_v27 }
 0x281   : > { %v1562_v33 = vrot.slane %v1561_v54, 1  ;;  %v1571_v39 = vrot.slane %v1570_v57, 1  ;;  %v1580_v45 = vrot.slane %v1579_v23, 1  ;;  %v1589_v38 = vrot.slane %v1588_v5, 1 }
 0x282   : > { %v1651_v25 = vadd.f32 %v1650_v47, %v1649_v7  ;;  %v1660_v35 = vadd.f32 %v1659_v14, %v1658_v63  ;;  %v1669_v34 = vadd.f32 %v1668_v11, %v1667_v17  ;;  %v1678_v16 = vadd.f32 %v1677_v59, %v1676_v21 }
 0x283   : > { %v1563_v32 = vadd.f32 %v1562_v33, %v1561_v54  ;;  %v1572_v8 = vadd.f32 %v1571_v39, %v1570_v57  ;;  %v1581_v55 = vadd.f32 %v1580_v45, %v1579_v23  ;;  %v1590_v20 = vadd.f32 %v1589_v38, %v1588_v5  ;;  %v1821_v45 = vld [vmem:[%s3510_s10] sm:$0x1] }
 0x285   : > { %v1679_v15 = vadd.f32 %v1651_v25, %v1563_v32  ;;  %v1681_v13 = vadd.f32 %v1669_v34, %v1581_v55  ;;  %v1680_v51 = vadd.f32 %v1660_v35, %v1572_v8  ;;  %v1682_v28 = vadd.f32 %v1678_v16, %v1590_v20 }
 0x287   : > { %v1706_v61 = vadd.f32 %v1692_v52, %v1680_v51  ;;  %v1708_v12 = vadd.f32 %v1700_v24, %v1682_v28  ;;  %v1705_v58 = vadd.f32 %v1688_v49, %v1679_v15  ;;  %v1707_v27 = vadd.f32 %v1696_v1, %v1681_v13 }
 0x289   : > { %v1710_v29 = vmin.f32 %v1706_v61, 20.0  ;;  %v1712_v60 = vmin.f32 %v1708_v12, 20.0  ;;  %v1709_v37 = vmin.f32 %v1705_v58, 20.0  ;;  %v1711_v9 = vmin.f32 %v1707_v27, 20.0 }
 0x28a   : > { %vm1750_vm3 = vcmp.gt.f32.partialorder %v1706_v61, 20.0  ;;  %vm1752_vm4 = vcmp.gt.f32.partialorder %v1708_v12, 20.0  ;;  %vm1749_vm5 = vcmp.gt.f32.partialorder %v1705_v58, 20.0  ;;  %vm1751_vm6 = vcmp.gt.f32.partialorder %v1707_v27, 20.0 }
 0x28b   : > { %v1715_v22 = vmul.f32 1.442695, %v1710_v29  ;;  %v1719_v41 = vmul.f32 1.442695, %v1712_v60  ;;  %v1713_v36 = vmul.f32 1.442695, %v1709_v37 }
 0x28c   : > { %v1717_v56 = vmul.f32 1.442695, %v1711_v9 }
 0x28d   : > { %2442 = vpow2.f32 %v1715_v22 }
 0x28e   : > { %2444 = vpow2.f32 %v1719_v41 }
 0x28f   : > { %2446 = vpow2.f32 %v1713_v36 }
 0x290   : > { %2448 = vpow2.f32 %v1717_v56 }
 0x29a   : > { %v2443_v0 = vpop.eup %2442 }
 0x29b   : > { %v2445_v26 = vpop.eup %2444  ;;  %v1722_v50 = vadd.f32 1.0, %v2443_v0 }
 0x29c   : > { %v2447_v30 = vpop.eup %2446  ;;  %v1724_v6 = vadd.f32 1.0, %v2445_v26 }
 0x29d   : > { %v2449_v42 = vpop.eup %2448  ;;  %v1726_v18 = vmul.f32 %v1722_v50, %v1722_v50  ;;  %v1721_v4 = vadd.f32 1.0, %v2447_v30 }
 0x29e   : > { %v1728_v40 = vmul.f32 %v1724_v6, %v1724_v6  ;;  %v1723_v31 = vadd.f32 1.0, %v2449_v42 }
 0x29f   : > { %v1738_v43 = vadd.f32 1.0, %v1726_v18  ;;  %v1725_v46 = vmul.f32 %v1721_v4, %v1721_v4  ;;  %v2170_v63 = vadd.f32 -1.0, %v1726_v18 }
 0x2a0   : > { %v1740_v2 = vadd.f32 1.0, %v1728_v40  ;;  %v1727_v3 = vmul.f32 %v1723_v31, %v1723_v31  ;;  %v2172_v17 = vadd.f32 -1.0, %v1728_v40 }
 0x2a1   : > { %2450 = vrcp.f32 %v1738_v43  ;;  %v1737_v53 = vadd.f32 1.0, %v1725_v46  ;;  %v2169_v21 = vadd.f32 -1.0, %v1725_v46  ;;  %v1734_v48 = vmul.f32 %v2170_v63, %v1706_v61 }
 0x2a2   : > { %2452 = vrcp.f32 %v1740_v2  ;;  %v1739_v7 = vadd.f32 1.0, %v1727_v3  ;;  %v2171_v44 = vadd.f32 -1.0, %v1727_v3  ;;  %v1736_v19 = vmul.f32 %v2172_v17, %v1708_v12 }
 0x2a3   : > { %2454 = vrcp.f32 %v1737_v53  ;;  %v1733_v14 = vmul.f32 %v2169_v21, %v1705_v58 }
 0x2a4   : > { %2456 = vrcp.f32 %v1739_v7  ;;  %v1735_v54 = vmul.f32 %v2171_v44, %v1707_v27 }
 0x2ae   : > { %v2451_v62 = vpop.eup %2450 }
 0x2af   : > { %v2453_v10 = vpop.eup %2452  ;;  %v1746_v47 = vmul.f32 %v2451_v62, %v1734_v48 }
 0x2b0   : > { %v2455_v11 = vpop.eup %2454  ;;  %v1748_v59 = vmul.f32 %v2453_v10, %v1736_v19 }
 0x2b1   : > { %v2457_v57 = vpop.eup %2456  ;;  %v1754_v23 = vsel %vm1750_vm3, %v1706_v61, %v1746_v47  ;;  %v1745_v5 = vmul.f32 %v2455_v11, %v1733_v14 }
 0x2b2   : > { %1886 = vmatprep.mubr.f32.mxu0 %v1754_v23  ;;  %v1756_v52 = vsel %vm1752_vm4, %v1708_v12, %v1748_v59  ;;  %v1747_v24 = vmul.f32 %v2457_v57, %v1735_v54 }
 0x2b3   : > { %1956 = vmatprep.mubr.f32.mxu1 %v1756_v52  ;;  %v1753_v49 = vsel %vm1749_vm5, %v1705_v58, %v1745_v5 }
 0x2b4   : > { %1887 = vmatmul.mubr.f32.vlgmr.msra.gmra.mxu0 %v1753_v49  ;;  %v1755_v1 = vsel %vm1751_vm6, %v1707_v27, %v1747_v24 }
 0x2b5   : > { %1957 = vmatmul.mubr.f32.vlgmr.msra.gmra.mxu1 %v1755_v1 }
 0x374   : > { %v2212_v33 = vpop.f32.mrf.mxu0 }
 0x375   : > { %v2247_v39 = vpop.f32.mrf.mxu1 }
 0x376   : > { %v2213_v38 = vpop.f32.mrf.mxu0 }
 0x377   : > { %v2214_v25 = vadd.f32 %v2213_v38, %v2212_v33  ;;  %v2248_v35 = vpop.f32.mrf.mxu1 }
 0x378   : > { %v2249_v16 = vadd.f32 %v2248_v35, %v2247_v39 }
 0x379   : > { %v1889_v34 = vadd.f32 %v2214_v25, %v1821_v45 }
 0x37b   : > { %v1959_v32 = vadd.f32 %v2249_v16, %v1889_v34 }
 0x37d   : > { %1963 = vst.msk [vmem:[%s479_s16] sm:$0x1] %vm1962_vm7, %v1959_v32 }
 0x37e   : > { %2471 = shalt.err (!%p2468_p5)
}
 0x37f   : > { %s2472_s23 = scalar_lea.hbm %s1975_s28, 16  ;;  %s2476_s15 = scalar_lea.hbm %s3511_s11, 32 }
 0x380   : > { %p2473_p6 = scmp.ne.s32.totalorder %s1975_s28, %s2472_s23  ;;  %p2477_p10 = scmp.lt.s32.totalorder %s1975_s28, %s3511_s11 }
 0x381   : > { %p2478_p11 = scmp.lt.s32.totalorder %s2476_s15, %s2472_s23 }
 0x382   : > { %p2474_p7 = pnand %p2473_p6, %p2640_p4 }
 0x383   : > { %p2479_p12 = por %p2478_p11, %p2477_p10 }
 0x384   : > { %p2475_p9 = pneg %p2474_p7 }
 0x386   : > { %p2480_p13 = pnand %p2479_p12, %p2475_p9 }
 0x388   : > { %2483 = shalt.err (!%p2480_p13)
}
 0x389   : > { %2250 = dma.vmem_to_hbm [thread:$0]  (%p2640_p4), %s1978_s24, 16, %s1975_s28, %s1965_s19  }
 0x38a PF: > { %p2256_p0 = scmp.ge.s32.totalorder %s2534_s22, 2  ;;  %s1989_s25 = sand.u32 1, %s2514_s17  }
 0x38b   : > { %s1990_s21 = scalar_lea.sflag [#allocation5], %s1989_s25 }
 0x38c   : > { %p2253_p1 = pnand %p2256_p0, %p2647_p8 }
 0x38e   : > { %p2254_p2 = pneg %p2253_p1 }
 0x390   : > { %2509 = dma.done.wait (%p2254_p2), %s1990_s21, 16  }
 0x391   : > { %2511 = vsyncadd (%p2254_p2), %s1990_s21, 4294967280  ;;  %s24_s22 = sadd.s32 1, %s2534_s22   ;;  %s3557_s29 = sld [smem:[#allocation7_spill]] }
 0x392   : > { %p21_p3 = scmp.ge.s32.totalorder %s24_s22, 4   ;;  %s3558_s19 = sld [smem:[#allocation11_spill]] }
 0x393   : > { %s3559_s20 = sld [smem:[#allocation8_spill]]  ;;  %s3561_s17 = smov %s2518_s18 }
 0x394   : > { %s3560_s21 = sld [smem:[#allocation9_spill]]  ;;  %23 = sbr.rel (!%p21_p3) target bundleno = 4 (0x4), region = 116 }
 0x397   : > { %s3562_s18 = smov %s3557_s29 }
 0x399   :  { %1994 = vsyncpa [#allocation5], 1 }
 0x39a   :  { %1996 = vsyncpa [#allocation5 + $0x1], 1 }

</bundles_post_ra>
